<compile_context>
chip_gen: v6e
topology: v6e:2x2x1
jax: 0.10.0
libtpu: 0.0.40
codegen_flags: <defaults>
</compile_context>

<pallas_src>
import jax
import jax.numpy as jnp
from jax.experimental import pallas as pl
from jax.experimental.pallas import tpu as pltpu

LAYER_DIMS = (32, 64, 128, 256, 1)


def mlp_kernel(x_ref,
               w1_ref, b1_ref,
               w2_ref, b2_ref,
               w3_ref, b3_ref,
               w4_ref, b4_ref,
               w5_ref, b5_ref,
               o_ref):
    # x_ref: (F, BT) bf16, batch on lanes. Weights are PyTorch-layout (out, in) bf16.
    x = x_ref[...]

    def layer(w_ref, b_ref, h_bf16):
        acc = jnp.dot(w_ref[...], h_bf16,               # MXU: bf16 in, f32 accumulate
                      preferred_element_type=jnp.float32)
        return jnp.maximum(acc + b_ref[...], 0.0)       # bias + ReLU in f32 (VPU)

    h = layer(w1_ref, b1_ref, x)                        # (32,  BT) f32
    h = layer(w2_ref, b2_ref, h.astype(jnp.bfloat16))   # (64,  BT) f32
    h = layer(w3_ref, b3_ref, h.astype(jnp.bfloat16))   # (128, BT) f32
    h = layer(w4_ref, b4_ref, h.astype(jnp.bfloat16))   # (256, BT) f32

    # fc5 has a single output unit: do it as a VPU multiply + sublane reduction
    # (keeps the MXU free and the (1, BT) result lane-dense).
    z = jnp.sum(h * w5_ref[...], axis=0, keepdims=True) + b5_ref[...]   # (1, BT) f32
    o_ref[...] = jax.nn.sigmoid(z)


def model1_forward(x, params, *, block_b=256):
    """x: (B, in_features) f32. params[f'fc{i}'] = (w (out,in), b (out,)) in f32."""
    B, F = x.shape
    num_blocks = pl.cdiv(B, block_b)
    b_pad = num_blocks * block_b

    # Pad batch to a multiple of the tile; transpose so batch lives on lanes.
    x_bf = x.astype(jnp.bfloat16)
    if b_pad != B:
        x_bf = jnp.pad(x_bf, ((0, b_pad - B), (0, 0)))
    x_t = x_bf.T                                        # (F, b_pad) bf16

    flat_args = [x_t]
    in_specs = [pl.BlockSpec((F, block_b), lambda i: (0, i))]
    for li in range(1, 6):
        w, b = params[f"fc{li}"]
        if li < 5:
            w_arg = w.astype(jnp.bfloat16)              # (out, in) bf16 for the MXU
            b_arg = b.reshape(-1, 1).astype(jnp.float32)
        else:
            w_arg = w.reshape(-1, 1).astype(jnp.float32)  # (256, 1) f32, VPU reduction
            b_arg = b.reshape(1, 1).astype(jnp.float32)
        flat_args += [w_arg, b_arg]
        # Constant block index -> fetched once, resident in VMEM across all grid steps.
        in_specs += [pl.BlockSpec(w_arg.shape, lambda i: (0, 0)),
                     pl.BlockSpec(b_arg.shape, lambda i: (0, 0))]

    dims = (F,) + LAYER_DIMS
    flops = 2 * b_pad * sum(dims[i] * dims[i + 1] for i in range(5))
    param_bytes = sum(int(a.size) * a.dtype.itemsize for a in flat_args[1:])
    cost = pl.CostEstimate(
        flops=flops,
        transcendentals=b_pad,                          # one sigmoid per row
        bytes_accessed=int(x_t.size) * 2 + b_pad * 4 + param_bytes,
    )

    out = pl.pallas_call(
        mlp_kernel,
        out_shape=jax.ShapeDtypeStruct((1, b_pad), jnp.float32),
        grid=(num_blocks,),
        in_specs=in_specs,
        out_specs=pl.BlockSpec((1, block_b), lambda i: (0, i)),
        compiler_params=pltpu.CompilerParams(
            dimension_semantics=("parallel",)),
        cost_estimate=cost,
    )(*flat_args)

    return out[0, :B].reshape(B, 1)


def init_params(in_features, key):
    """PyTorch-style init: U(-1/sqrt(fan_in), 1/sqrt(fan_in)); w stored as (out, in)."""
    dims = (in_features,) + LAYER_DIMS
    params = {}
    for i in range(5):
        fan_in, fan_out = dims[i], dims[i + 1]
        key, kw, kb = jax.random.split(key, 3)
        bound = 1.0 / jnp.sqrt(fan_in)
        w = jax.random.uniform(kw, (fan_out, fan_in), jnp.float32, -bound, bound)
        b = jax.random.uniform(kb, (fan_out,), jnp.float32, -bound, bound)
        params[f"fc{i + 1}"] = (w, b)
    return params


def reference_forward_f32(x, params):
    h = x
    for i in range(1, 5):
        w, b = params[f"fc{i}"]
        h = jnp.maximum(h @ w.T + b, 0.0)
    w, b = params["fc5"]
    return jax.nn.sigmoid(h @ w.T + b)


def reference_forward_matched(x, params):
    """Same bf16-matmul / f32-accumulate recipe as the kernel, in plain JAX."""
    h_f32 = x
    for i in range(1, 5):
        w, b = params[f"fc{i}"]
        acc = jnp.dot(h_f32.astype(jnp.bfloat16), w.astype(jnp.bfloat16).T,
                      preferred_element_type=jnp.float32)
        h_f32 = jnp.maximum(acc + b, 0.0)
    w, b = params["fc5"]
    return jax.nn.sigmoid(h_f32 @ w.T + b)


if __name__ == "__main__":
    IN_FEATURES = 16
    B = 1000                      # deliberately not a multiple of the 256-row batch tile
    key = jax.random.PRNGKey(0)
    key, kx = jax.random.split(key)
    x = jax.random.normal(kx, (B, IN_FEATURES), jnp.float32)
    params = init_params(IN_FEATURES, key)

    out = jax.block_until_ready(model1_forward(x, params, block_b=256))

    ref_matched = reference_forward_matched(x, params)
    ref_f32 = reference_forward_f32(x, params)

    assert out.shape == (B, 1)
    assert bool(jnp.all(jnp.isfinite(out)))
    # Tight check vs a matched-precision (bf16-matmul) reference.
    assert jnp.allclose(out, ref_matched, atol=1e-4, rtol=1e-4)
    # Loose sanity check vs the full-f32 reference (bf16 rounding tolerance).
    assert jnp.allclose(out, ref_f32, atol=5e-2, rtol=5e-2)

    print("KERNEL_OK")
</pallas_src>

<mosaic_0001>
module attributes {stable_mosaic.version = 11 : i64} {
  func.func @mlp_kernel(%arg0: i32, %arg1: memref<16x256xbf16, #tpu.memory_space<vmem>>, %arg2: memref<32x16xbf16, #tpu.memory_space<vmem>>, %arg3: memref<32x1xf32, #tpu.memory_space<vmem>>, %arg4: memref<64x32xbf16, #tpu.memory_space<vmem>>, %arg5: memref<64x1xf32, #tpu.memory_space<vmem>>, %arg6: memref<128x64xbf16, #tpu.memory_space<vmem>>, %arg7: memref<128x1xf32, #tpu.memory_space<vmem>>, %arg8: memref<256x128xbf16, #tpu.memory_space<vmem>>, %arg9: memref<256x1xf32, #tpu.memory_space<vmem>>, %arg10: memref<256x1xf32, #tpu.memory_space<vmem>>, %arg11: memref<1x1xf32, #tpu.memory_space<vmem>>, %arg12: memref<1x256xf32, #tpu.memory_space<vmem>>) attributes {dimension_semantics = [#tpu.dimension_semantics<parallel>], iteration_bounds = array<i64: 4>, scalar_prefetch = 0 : i64, scratch_operands = 0 : i64, tpu.core_type = #tpu.core_type<tc>, window_params = [{transform_indices = @transform_0, window_bounds = array<i64: 16, 256>}, {pipeline_mode = #tpu.pipeline_mode<synchronous>, transform_indices = @transform_1, window_bounds = array<i64: 32, 16>}, {pipeline_mode = #tpu.pipeline_mode<synchronous>, transform_indices = @transform_2, window_bounds = array<i64: 32, 1>}, {pipeline_mode = #tpu.pipeline_mode<synchronous>, transform_indices = @transform_3, window_bounds = array<i64: 64, 32>}, {pipeline_mode = #tpu.pipeline_mode<synchronous>, transform_indices = @transform_4, window_bounds = array<i64: 64, 1>}, {pipeline_mode = #tpu.pipeline_mode<synchronous>, transform_indices = @transform_5, window_bounds = array<i64: 128, 64>}, {pipeline_mode = #tpu.pipeline_mode<synchronous>, transform_indices = @transform_6, window_bounds = array<i64: 128, 1>}, {pipeline_mode = #tpu.pipeline_mode<synchronous>, transform_indices = @transform_7, window_bounds = array<i64: 256, 128>}, {pipeline_mode = #tpu.pipeline_mode<synchronous>, transform_indices = @transform_8, window_bounds = array<i64: 256, 1>}, {pipeline_mode = #tpu.pipeline_mode<synchronous>, transform_indices = @transform_9, window_bounds = array<i64: 256, 1>}, {pipeline_mode = #tpu.pipeline_mode<synchronous>, transform_indices = @transform_10, window_bounds = array<i64: 1, 1>}, {transform_indices = @transform_11, window_bounds = array<i64: 1, 256>}]} {
    %c0 = arith.constant 0 : index
    %c0_0 = arith.constant 0 : index
    %0 = vector.load %arg1[%c0, %c0_0] : memref<16x256xbf16, #tpu.memory_space<vmem>>, vector<16x256xbf16>
    %c0_1 = arith.constant 0 : index
    %c0_2 = arith.constant 0 : index
    %1 = vector.load %arg2[%c0_1, %c0_2] : memref<32x16xbf16, #tpu.memory_space<vmem>>, vector<32x16xbf16>
    %cst = arith.constant dense<0.000000e+00> : vector<32x256xf32>
    %2 = tpu.matmul %1, %0, %cst {dimension_numbers = #tpu.dot_dimension_numbers<[1], [0], [0], [1], [0, 0, 1, 1], [], []>} : vector<32x16xbf16>, vector<16x256xbf16>, vector<32x256xf32> -> vector<32x256xf32>
    %c0_3 = arith.constant 0 : index
    %c0_4 = arith.constant 0 : index
    %3 = vector.load %arg3[%c0_3, %c0_4] : memref<32x1xf32, #tpu.memory_space<vmem>>, vector<32x1xf32>
    %4 = vector.broadcast %3 : vector<32x1xf32> to vector<32x256xf32>
    %5 = arith.addf %2, %4 : vector<32x256xf32>
    %cst_5 = arith.constant 0.000000e+00 : f32
    %6 = vector.broadcast %cst_5 : f32 to vector<32x256xf32>
    %7 = arith.maximumf %5, %6 : vector<32x256xf32>
    %8 = arith.truncf %7 : vector<32x256xf32> to vector<32x256xbf16>
    %c0_6 = arith.constant 0 : index
    %c0_7 = arith.constant 0 : index
    %9 = vector.load %arg4[%c0_6, %c0_7] : memref<64x32xbf16, #tpu.memory_space<vmem>>, vector<64x32xbf16>
    %cst_8 = arith.constant dense<0.000000e+00> : vector<64x256xf32>
    %10 = tpu.matmul %9, %8, %cst_8 {dimension_numbers = #tpu.dot_dimension_numbers<[1], [0], [0], [1], [0, 0, 1, 1], [], []>} : vector<64x32xbf16>, vector<32x256xbf16>, vector<64x256xf32> -> vector<64x256xf32>
    %c0_9 = arith.constant 0 : index
    %c0_10 = arith.constant 0 : index
    %11 = vector.load %arg5[%c0_9, %c0_10] : memref<64x1xf32, #tpu.memory_space<vmem>>, vector<64x1xf32>
    %12 = vector.broadcast %11 : vector<64x1xf32> to vector<64x256xf32>
    %13 = arith.addf %10, %12 : vector<64x256xf32>
    %cst_11 = arith.constant 0.000000e+00 : f32
    %14 = vector.broadcast %cst_11 : f32 to vector<64x256xf32>
    %15 = arith.maximumf %13, %14 : vector<64x256xf32>
    %16 = arith.truncf %15 : vector<64x256xf32> to vector<64x256xbf16>
    %c0_12 = arith.constant 0 : index
    %c0_13 = arith.constant 0 : index
    %17 = vector.load %arg6[%c0_12, %c0_13] : memref<128x64xbf16, #tpu.memory_space<vmem>>, vector<128x64xbf16>
    %cst_14 = arith.constant dense<0.000000e+00> : vector<128x256xf32>
    %18 = tpu.matmul %17, %16, %cst_14 {dimension_numbers = #tpu.dot_dimension_numbers<[1], [0], [0], [1], [0, 0, 1, 1], [], []>} : vector<128x64xbf16>, vector<64x256xbf16>, vector<128x256xf32> -> vector<128x256xf32>
    %c0_15 = arith.constant 0 : index
    %c0_16 = arith.constant 0 : index
    %19 = vector.load %arg7[%c0_15, %c0_16] : memref<128x1xf32, #tpu.memory_space<vmem>>, vector<128x1xf32>
    %20 = vector.broadcast %19 : vector<128x1xf32> to vector<128x256xf32>
    %21 = arith.addf %18, %20 : vector<128x256xf32>
    %cst_17 = arith.constant 0.000000e+00 : f32
    %22 = vector.broadcast %cst_17 : f32 to vector<128x256xf32>
    %23 = arith.maximumf %21, %22 : vector<128x256xf32>
    %24 = arith.truncf %23 : vector<128x256xf32> to vector<128x256xbf16>
    %c0_18 = arith.constant 0 : index
    %c0_19 = arith.constant 0 : index
    %25 = vector.load %arg8[%c0_18, %c0_19] : memref<256x128xbf16, #tpu.memory_space<vmem>>, vector<256x128xbf16>
    %cst_20 = arith.constant dense<0.000000e+00> : vector<256x256xf32>
    %26 = tpu.matmul %25, %24, %cst_20 {dimension_numbers = #tpu.dot_dimension_numbers<[1], [0], [0], [1], [0, 0, 1, 1], [], []>} : vector<256x128xbf16>, vector<128x256xbf16>, vector<256x256xf32> -> vector<256x256xf32>
    %c0_21 = arith.constant 0 : index
    %c0_22 = arith.constant 0 : index
    %27 = vector.load %arg9[%c0_21, %c0_22] : memref<256x1xf32, #tpu.memory_space<vmem>>, vector<256x1xf32>
    %28 = vector.broadcast %27 : vector<256x1xf32> to vector<256x256xf32>
    %29 = arith.addf %26, %28 : vector<256x256xf32>
    %cst_23 = arith.constant 0.000000e+00 : f32
    %30 = vector.broadcast %cst_23 : f32 to vector<256x256xf32>
    %31 = arith.maximumf %29, %30 : vector<256x256xf32>
    %c0_24 = arith.constant 0 : index
    %c0_25 = arith.constant 0 : index
    %32 = vector.load %arg10[%c0_24, %c0_25] : memref<256x1xf32, #tpu.memory_space<vmem>>, vector<256x1xf32>
    %33 = vector.broadcast %32 : vector<256x1xf32> to vector<256x256xf32>
    %34 = arith.mulf %31, %33 : vector<256x256xf32>
    %cst_26 = arith.constant dense<0.000000e+00> : vector<256xf32>
    %35 = vector.multi_reduction <add>, %34, %cst_26 [0] : vector<256x256xf32> to vector<256xf32>
    %36 = vector.shape_cast %35 : vector<256xf32> to vector<1x256xf32>
    %c0_27 = arith.constant 0 : index
    %c0_28 = arith.constant 0 : index
    %37 = vector.load %arg11[%c0_27, %c0_28] : memref<1x1xf32, #tpu.memory_space<vmem>>, vector<1x1xf32>
    %38 = vector.broadcast %37 : vector<1x1xf32> to vector<1x256xf32>
    %39 = arith.addf %36, %38 : vector<1x256xf32>
    %40 = arith.negf %39 : vector<1x256xf32>
    %41 = math.exp %40 : vector<1x256xf32>
    %cst_29 = arith.constant 1.000000e+00 : f32
    %42 = vector.broadcast %cst_29 : f32 to vector<1x256xf32>
    %43 = arith.addf %42, %41 : vector<1x256xf32>
    %44 = arith.divf %42, %43 : vector<1x256xf32>
    %c0_30 = arith.constant 0 : index
    %c0_31 = arith.constant 0 : index
    %45 = vector.load %arg12[%c0_30, %c0_31] : memref<1x256xf32, #tpu.memory_space<vmem>>, vector<1x256xf32>
    tpu.vector_store %arg12[%c0_30, %c0_31], %44 {strides = array<i32>} : memref<1x256xf32, #tpu.memory_space<vmem>>, vector<1x256xf32>,
    return
  }
  func.func @transform_0(%arg0: i32) -> (i32, i32) {
    %c0_i32 = arith.constant 0 : i32
    %c0_i32_0 = arith.constant 0 : i32
    return %c0_i32, %arg0 : i32, i32
  }
  func.func @transform_1(%arg0: i32) -> (i32, i32) {
    %c0_i32 = arith.constant 0 : i32
    %c0_i32_0 = arith.constant 0 : i32
    %c0_i32_1 = arith.constant 0 : i32
    return %c0_i32, %c0_i32_0 : i32, i32
  }
  func.func @transform_2(%arg0: i32) -> (i32, i32) {
    %c0_i32 = arith.constant 0 : i32
    %c0_i32_0 = arith.constant 0 : i32
    %c0_i32_1 = arith.constant 0 : i32
    return %c0_i32, %c0_i32_0 : i32, i32
  }
  func.func @transform_3(%arg0: i32) -> (i32, i32) {
    %c0_i32 = arith.constant 0 : i32
    %c0_i32_0 = arith.constant 0 : i32
    %c0_i32_1 = arith.constant 0 : i32
    return %c0_i32, %c0_i32_0 : i32, i32
  }
  func.func @transform_4(%arg0: i32) -> (i32, i32) {
    %c0_i32 = arith.constant 0 : i32
    %c0_i32_0 = arith.constant 0 : i32
    %c0_i32_1 = arith.constant 0 : i32
    return %c0_i32, %c0_i32_0 : i32, i32
  }
  func.func @transform_5(%arg0: i32) -> (i32, i32) {
    %c0_i32 = arith.constant 0 : i32
    %c0_i32_0 = arith.constant 0 : i32
    %c0_i32_1 = arith.constant 0 : i32
    return %c0_i32, %c0_i32_0 : i32, i32
  }
  func.func @transform_6(%arg0: i32) -> (i32, i32) {
    %c0_i32 = arith.constant 0 : i32
    %c0_i32_0 = arith.constant 0 : i32
    %c0_i32_1 = arith.constant 0 : i32
    return %c0_i32, %c0_i32_0 : i32, i32
  }
  func.func @transform_7(%arg0: i32) -> (i32, i32) {
    %c0_i32 = arith.constant 0 : i32
    %c0_i32_0 = arith.constant 0 : i32
    %c0_i32_1 = arith.constant 0 : i32
    return %c0_i32, %c0_i32_0 : i32, i32
  }
  func.func @transform_8(%arg0: i32) -> (i32, i32) {
    %c0_i32 = arith.constant 0 : i32
    %c0_i32_0 = arith.constant 0 : i32
    %c0_i32_1 = arith.constant 0 : i32
    return %c0_i32, %c0_i32_0 : i32, i32
  }
  func.func @transform_9(%arg0: i32) -> (i32, i32) {
    %c0_i32 = arith.constant 0 : i32
    %c0_i32_0 = arith.constant 0 : i32
    %c0_i32_1 = arith.constant 0 : i32
    return %c0_i32, %c0_i32_0 : i32, i32
  }
  func.func @transform_10(%arg0: i32) -> (i32, i32) {
    %c0_i32 = arith.constant 0 : i32
    %c0_i32_0 = arith.constant 0 : i32
    %c0_i32_1 = arith.constant 0 : i32
    return %c0_i32, %c0_i32_0 : i32, i32
  }
  func.func @transform_11(%arg0: i32) -> (i32, i32) {
    %c0_i32 = arith.constant 0 : i32
    %c0_i32_0 = arith.constant 0 : i32
    return %c0_i32, %arg0 : i32, i32
  }
}

</mosaic_0001>

<bundles_post_ra>
// kernel: tpu_custom_call.1
= control target key start
LH: loop header
LB: loop body
LE: loop exit
PB: predicated region body
PF: predicated region fallthrough
CT: control target
= control target key end

     0   :  { %s3258_s0 = inlined_call_operand.vmem [shape: bf16[16,1024], index: 0, kind: input, shape index: {}]   ;;  %s3259_s1 = inlined_call_operand.vmem [shape: bf16[32,16], index: 1, kind: input, shape index: {}]   ;;  %s3260_s2 = inlined_call_operand.vmem [shape: f32[32,1], index: 2, kind: input, shape index: {}]   ;;  %s3261_s3 = inlined_call_operand.vmem [shape: bf16[64,32], index: 3, kind: input, shape index: {}]   ;;  %s3262_s4 = inlined_call_operand.vmem [shape: f32[64,1], index: 4, kind: input, shape index: {}]   ;;  %s3263_s5 = inlined_call_operand.vmem [shape: bf16[128,64], index: 5, kind: input, shape index: {}]   ;;  %s3264_s6 = inlined_call_operand.vmem [shape: f32[128,1], index: 6, kind: input, shape index: {}]   ;;  %s3265_s7 = inlined_call_operand.vmem [shape: bf16[256,128], index: 7, kind: input, shape index: {}]   ;;  %s3266_s8 = inlined_call_operand.vmem [shape: f32[256,1], index: 8, kind: input, shape index: {}]   ;;  %s3267_s9 = inlined_call_operand.vmem [shape: f32[256,1], index: 9, kind: input, shape index: {}]   ;;  %s3268_s10 = inlined_call_operand.<no memory space> [shape: f32[1,1], index: 10, kind: input, shape index: {}]   ;;  %s3269_s11 = inlined_call_operand.hbm [shape: f32[1,1024], index: 11, kind: output, shape index: {}]  }
   0x1   :  { %3281 = sst [smem:[#allocation18_spill]] %s3258_s0  ;;  %v16_v0 = vstv %s3268_s10 }
   0x2   :  { %17 = vst [vmem:[#allocation2] sm:$0x1] %v16_v0 }
   0x3   :  { %18 = vsyncpa [#allocation5], 0 }
   0x4   :  { %20 = vsyncpa [#allocation5 + $0x1], 0  ;;  %s2402_s19 = smov 0   ;;  %s2404_s20 = smov 0  }
   0x5   :  { %s2406_s21 = smov 0   ;;  %s2408_s22 = smov 0  }
   0x6 LB: > { %s2109_s10 = sadd.s32 4294967295, %s2334_s22   ;;  %s2110_s23 = sadd.s32 4294967294, %s2334_s22   ;;  %s2334_s22 = sphi %s2408_s22, %s3310_s22   ;;  %s2330_s21 = sphi %s2406_s21, %s3309_s21   ;;  %s2326_s20 = sphi %s2404_s20, %s3308_s20   ;;  %s2322_s19 = sphi %s2402_s19, %s3307_s19  }
   0x7   : > { %s2425_s24 = sadd.s32 1, %s2334_s22   ;;  %s33_s25 = sadd.s32 1, %s2330_s21 }
   0x8   : > { %s30_s26 = ssub.s32 %s2334_s22, %s2425_s24  ;;  %p40_p0 = scmp.ne.s32.totalorder %s2330_s21, %s2326_s20 }
   0x9   : > { %p31_p1 = scmp.eq.s32.totalorder %s30_s26, 0  ;;  %p41_p2 = scmp.eq.s32.totalorder %s2334_s22, 0 }
   0xa   : > { %p280_p3 = scmp.eq.s32.totalorder %s2109_s10, 3  ;;  %p285_p4 = scmp.ne.s32.totalorder %s2326_s20, %s2322_s19 }
   0xb   : > { %s2438_s27 = scalar_select %p31_p1, %s2330_s21, %s33_s25  }
   0xc   : > { %p42_p5 = por %p41_p2, %p40_p0  ;;  %p2440_p6 = por %p280_p3, %p40_p0 }
   0xd   : > { %p286_p7 = scmp.eq.s32.totalorder %s2110_s23, 3  ;;  %p2112_p9 = scmp.ge.s32.totalorder %s2334_s22, 4 }
   0xf   : > { %p2444_p8 = por %p286_p7, %p285_p4  ;;  %332 = sbr.rel (%p2112_p9) target bundleno = 32 (0x20), region = 56 }
  0x14   : > { %335 = sbr.rel (!%p42_p5) target bundleno = 32 (0x20), region = 60  ;;  %s337_s30 = sand.u32 (%p42_p5), 1, %s2330_s21  }
  0x15   : > { %s2172_s12 = sshll.u32 (%p42_p5), %s2334_s22, 3  ;;  %s2113_s13 = sshll.u32 (%p42_p5), %s337_s30, 4 }
  0x16   : > { %s3284_s0 = sld [smem:[#allocation18_spill]] (%p42_p5)  ;;  %s339_s17 = scalar_lea.vmem (%p42_p5), [#allocation3], %s2113_s13 }
  0x1c   : > { %s342_s16 = scalar_lea.vmem %s3284_s0, %s2172_s12 }
  0x1d   : > { %v373_v1 = vld [vmem:[%s342_s16] sm:$0xff] }
  0x1e   : > { %v375_v2 = vld [vmem:[%s342_s16 + $0x20] sm:$0xff]  ;;  %374 = vst [vmem:[%s339_s17] sm:$0xff] %v373_v1 }
  0x1f   : > { %376 = vst [vmem:[%s339_s17 + $0x8] sm:$0xff] %v375_v2 }
  0x20 PF: > { %p2116_p10 = scmp.ge.s32.totalorder %s2334_s22, 1  ;;  %p381_p11 = scmp.lt.s32.totalorder %s2334_s22, 5 }
  0x22   : > { %p382_p12 = pnand %p2116_p10, %p381_p11 }
  0x24   : > { %385 = sbr.rel (%p382_p12) target bundleno = 1160 (0x488), region = 98 }
  0x29   : > { %v438_v3 = vld [vmem:[%s3260_s2 + $0x10] sm:$0xff]  ;;  %v436_v4 = vld [vmem:[%s3260_s2] sm:$0xff]  ;;  %s2463_s30 = sand.u32 1, %s2326_s20   ;;  %v2336_v5 = vmov 0   ;;  %v439_v6 = vld [vmem:[%s3260_s2 + $0x18] sm:$0xff]  ;;  %vm480_vm0 = vcmask 130048  }
  0x2a   : > { %2232 = vset.pattern.permute.xlu1 %v2336_v5  ;;  %2231 = vset.pattern.permute.xlu0 %v2336_v5  ;;  %s2117_s14 = sshll.u32 %s2463_s30, 4  ;;  %v437_v7 = vld [vmem:[%s3260_s2 + $0x8] sm:$0xff]  ;;  %v566_v10 = vld [vmem:[%s3262_s4 + $0x30] sm:$0xff]  ;;  %v567_v11 = vld [vmem:[%s3262_s4 + $0x38] sm:$0xff]  ;;  %vm628_vm1 = vcmask 261120   ;;  %vm890_vm2 = vcmask 523264  }
  0x2b   : > { %452 = vperm.xlu0 %2231, %v438_v3   ;;  %442 = vperm.xlu1 %2232, %v436_v4   ;;  %s390_s17 = scalar_lea.vmem [#allocation3], %s2117_s14  ;;  %v2236_v12 = vld [vmem:[%s3259_s1] sm:$0xff]   ;;  %v565_v14 = vld [vmem:[%s3262_s4 + $0x28] sm:$0xff]  ;;  %v562_v15 = vld [vmem:[%s3262_s4 + $0x10] sm:$0xff]  ;;  %s2118_s14 = sshll.u32 %s2463_s30, 1 }
  0x2c   : > { %v2233_v8 = vld [vmem:[%s390_s17 + $0x4] ss:$8 sps:$4 sm:$0xff]   ;;  %519 = vmatprep.mubr.bf16.mxu0 %v2336_v5  ;;  %673 = vmatprep.mubr.bf16.mxu1 %v2336_v5  ;;  %v2235_v9 = vld [vmem:[%s390_s17] ss:$8 sps:$4 sm:$0xff]   ;;  %s2173_s15 = sshll.u32 %s2109_s10, 5  ;;  %s426_s16 = scalar_lea.vmem [#allocation4], %s2118_s14 }
  0x2d   : > { %501 = vmatprep.subr.bf16.mxu0 %v2233_v8  ;;  %v564_v13 = vld [vmem:[%s3262_s4 + $0x20] sm:$0xff]  ;;  %v563_v16 = vld [vmem:[%s3262_s4 + $0x18] sm:$0xff]  ;;  %v2237_v17 = vld [vmem:[%s3259_s1 + $0x8] sm:$0xff]   ;;  %s2045_s17 = sshll.u32 %s426_s16, 4  ;;  %s2043_s25 = scalar_lea.hbm %s3269_s11, %s2173_s15  ;;  %s2046_s17 = int_to_ptr.vmem [resolvable:$true] %s2045_s17 }
  0x2e   : > { %502 = vmatpush1.bf16.msra.mxu0 %v2235_v9  ;;  %v560_v18 = vld [vmem:[%s3262_s4] sm:$0xff]  ;;  %v561_v19 = vld [vmem:[%s3262_s4 + $0x8] sm:$0xff]  ;;  %v768_v20 = vld [vmem:[%s3264_s6 + $0x70] sm:$0xff]  ;;  %s2031_s26 = scalar_lea.sflag [#allocation5], %s2463_s30  ;;  %s2274_s12 = scalar_lea.vmem %s2046_s17, 32 }
  0x2f   : > { %457 = vperm.xlu0 %2231, %v439_v6   ;;  %447 = vperm.xlu1 %2232, %v437_v7   ;;  %v769_v21 = vld [vmem:[%s3264_s6 + $0x78] sm:$0xff]  ;;  %v766_v22 = vld [vmem:[%s3264_s6 + $0x60] sm:$0xff]  ;;  %v767_v23 = vld [vmem:[%s3264_s6 + $0x68] sm:$0xff]  ;;  %p2275_p13 = scmp.ne.s32.totalorder %s2046_s17, %s2274_s12  ;;  %s2338_s13 = smov [#allocation4]  }
  0x30   : > { %v764_v24 = vld [vmem:[%s3264_s6 + $0x50] sm:$0xff]  ;;  %v765_v25 = vld [vmem:[%s3264_s6 + $0x58] sm:$0xff]  ;;  %v762_v26 = vld [vmem:[%s3264_s6 + $0x40] sm:$0xff]  ;;  %s2278_s0 = sshll.u32 %s2338_s13, 4  ;;  %s2279_s0 = int_to_ptr.vmem [resolvable:$false] %s2278_s0 }
  0x31   : > { %2123 = vmatmul.mubr.msk.bf16.vlgmr.msra.gmra.mxu0 %vm480_vm0, %v2236_v12  ;;  %v763_v27 = vld [vmem:[%s3264_s6 + $0x48] sm:$0xff]  ;;  %v760_v28 = vld [vmem:[%s3264_s6 + $0x30] sm:$0xff]  ;;  %v761_v29 = vld [vmem:[%s3264_s6 + $0x38] sm:$0xff]  ;;  %p2276_p0 = pnand %p2275_p13, %p2440_p6  ;;  %s2280_s10 = scalar_lea.vmem %s2279_s0, 64 }
  0x32   : > { %529 = vmatprep.mubr.bf16.mxu0 %v2336_v5  ;;  %v758_v30 = vld [vmem:[%s3264_s6 + $0x20] sm:$0xff]  ;;  %v759_v31 = vld [vmem:[%s3264_s6 + $0x28] sm:$0xff]  ;;  %v756_v32 = vld [vmem:[%s3264_s6 + $0x10] sm:$0xff]  ;;  %p2281_p2 = scmp.lt.s32.totalorder %s2046_s17, %s2279_s0  ;;  %p2282_p3 = scmp.lt.s32.totalorder %s2280_s10, %s2274_s12 }
  0x33   : > { %600 = vperm.xlu0 %2231, %v566_v10   ;;  %605 = vperm.xlu1 %2232, %v567_v11   ;;  %v757_v33 = vld [vmem:[%s3264_s6 + $0x18] sm:$0xff]  ;;  %v754_v34 = vld [vmem:[%s3264_s6] sm:$0xff]  ;;  %v755_v35 = vld [vmem:[%s3264_s6 + $0x8] sm:$0xff]  ;;  %p2277_p1 = pneg %p2276_p0 }
  0x34   : > { %v1108_v36 = vld [vmem:[%s3266_s8] sm:$0xff]  ;;  %v1109_v37 = vld [vmem:[%s3266_s8 + $0x8] sm:$0xff]  ;;  %v1110_v38 = vld [vmem:[%s3266_s8 + $0x10] sm:$0xff]  ;;  %p2283_p4 = por %p2282_p3, %p2281_p2 }
  0x35   : > { %v1111_v39 = vld [vmem:[%s3266_s8 + $0x18] sm:$0xff]  ;;  %v1112_v40 = vld [vmem:[%s3266_s8 + $0x20] sm:$0xff]  ;;  %v1113_v41 = vld [vmem:[%s3266_s8 + $0x28] sm:$0xff] }
  0x36   : > { %v1114_v42 = vld [vmem:[%s3266_s8 + $0x30] sm:$0xff]  ;;  %v1115_v43 = vld [vmem:[%s3266_s8 + $0x38] sm:$0xff]  ;;  %v1116_v44 = vld [vmem:[%s3266_s8 + $0x40] sm:$0xff]  ;;  %p2284_p5 = pnand %p2283_p4, %p2277_p1 }
  0x37   : > { %590 = vperm.xlu0 %2231, %v564_v13   ;;  %595 = vperm.xlu1 %2232, %v565_v14   ;;  %v1117_v45 = vld [vmem:[%s3266_s8 + $0x48] sm:$0xff]  ;;  %v1118_v46 = vld [vmem:[%s3266_s8 + $0x50] sm:$0xff]  ;;  %v1119_v47 = vld [vmem:[%s3266_s8 + $0x58] sm:$0xff] }
  0x38   : > { %v1120_v48 = vld [vmem:[%s3266_s8 + $0x60] sm:$0xff]  ;;  %v1121_v49 = vld [vmem:[%s3266_s8 + $0x68] sm:$0xff]  ;;  %v1122_v50 = vld [vmem:[%s3266_s8 + $0x70] sm:$0xff] }
  0x39   : > { %2124 = vmatmul.mubr.msk.bf16.gmra.mxu0 %vm480_vm0, %v2237_v17  ;;  %v1123_v51 = vld [vmem:[%s3266_s8 + $0x78] sm:$0xff]  ;;  %v1124_v52 = vld [vmem:[%s3266_s8 + $0x80] sm:$0xff]  ;;  %v1125_v53 = vld [vmem:[%s3266_s8 + $0x88] sm:$0xff] }
  0x3a   : > { %947 = vmatprep.mubr.bf16.mxu0 %v2336_v5  ;;  %v1126_v54 = vld [vmem:[%s3266_s8 + $0x90] sm:$0xff]  ;;  %v1127_v55 = vld [vmem:[%s3266_s8 + $0x98] sm:$0xff]  ;;  %v1653_v56 = vld [vmem:[%s3267_s9] sm:$0xff] }
  0x3b   : > { %580 = vperm.xlu0 %2231, %v562_v15   ;;  %585 = vperm.xlu1 %2232, %v563_v16   ;;  %v1654_v57 = vld [vmem:[%s3267_s9 + $0x8] sm:$0xff]  ;;  %v1655_v58 = vld [vmem:[%s3267_s9 + $0x10] sm:$0xff]  ;;  %v1656_v59 = vld [vmem:[%s3267_s9 + $0x18] sm:$0xff] }
  0x3c   : > { %v1657_v60 = vld [vmem:[%s3267_s9 + $0x20] sm:$0xff]  ;;  %v1658_v61 = vld [vmem:[%s3267_s9 + $0x28] sm:$0xff]  ;;  %v1659_v62 = vld [vmem:[%s3267_s9 + $0x30] sm:$0xff] }
  0x3d   : > { %v1660_v63 = vld [vmem:[%s3267_s9 + $0x38] sm:$0xff]  ;;  %v1661_v0 = vld [vmem:[%s3267_s9 + $0x40] sm:$0xff]  ;;  %v1662_v1 = vld [vmem:[%s3267_s9 + $0x48] sm:$0xff] }
  0x3e   : > { %v1663_v2 = vld [vmem:[%s3267_s9 + $0x50] sm:$0xff]  ;;  %v1664_v3 = vld [vmem:[%s3267_s9 + $0x58] sm:$0xff]  ;;  %v1665_v4 = vld [vmem:[%s3267_s9 + $0x60] sm:$0xff] }
  0x3f   : > { %570 = vperm.xlu0 %2231, %v560_v18   ;;  %575 = vperm.xlu1 %2232, %v561_v19   ;;  %v1666_v6 = vld [vmem:[%s3267_s9 + $0x68] sm:$0xff]  ;;  %v1667_v7 = vld [vmem:[%s3267_s9 + $0x70] sm:$0xff]  ;;  %v1668_v8 = vld [vmem:[%s3267_s9 + $0x78] sm:$0xff] }
  0x40   : > { %v1669_v9 = vld [vmem:[%s3267_s9 + $0x80] sm:$0xff]  ;;  %v1670_v10 = vld [vmem:[%s3267_s9 + $0x88] sm:$0xff]  ;;  %v1671_v12 = vld [vmem:[%s3267_s9 + $0x90] sm:$0xff] }
  0x41   : > { %v1128_v11 = vld [vmem:[%s3266_s8 + $0xa0] sm:$0xff]  ;;  %v1129_v13 = vld [vmem:[%s3266_s8 + $0xa8] sm:$0xff]  ;;  %v1672_v14 = vld [vmem:[%s3267_s9 + $0x98] sm:$0xff] }
  0x42   : > { %v1130_v15 = vld [vmem:[%s3266_s8 + $0xb0] sm:$0xff]  ;;  %v1673_v16 = vld [vmem:[%s3267_s9 + $0xa0] sm:$0xff]  ;;  %v1131_v17 = vld [vmem:[%s3266_s8 + $0xb8] sm:$0xff] }
  0x43   : > { %842 = vperm.xlu0 %2231, %v768_v20   ;;  %847 = vperm.xlu1 %2232, %v769_v21   ;;  %v1674_v18 = vld [vmem:[%s3267_s9 + $0xa8] sm:$0xff]  ;;  %v1132_v19 = vld [vmem:[%s3266_s8 + $0xc0] sm:$0xff]  ;;  %v1675_v20 = vld [vmem:[%s3267_s9 + $0xb0] sm:$0xff] }
  0x44   : > { %v1133_v21 = vld [vmem:[%s3266_s8 + $0xc8] sm:$0xff] }
  0x47   : > { %832 = vperm.xlu0 %2231, %v766_v22   ;;  %837 = vperm.xlu1 %2232, %v767_v23   ;;  %v1676_v22 = vld [vmem:[%s3267_s9 + $0xb8] sm:$0xff]  ;;  %v1134_v23 = vld [vmem:[%s3266_s8 + $0xd0] sm:$0xff] }
  0x4b   : > { %822 = vperm.xlu0 %2231, %v764_v24   ;;  %827 = vperm.xlu1 %2232, %v765_v25   ;;  %v1677_v24 = vld [vmem:[%s3267_s9 + $0xc0] sm:$0xff]  ;;  %v1135_v25 = vld [vmem:[%s3266_s8 + $0xd8] sm:$0xff] }
  0x4f   : > { %812 = vperm.xlu0 %2231, %v762_v26   ;;  %817 = vperm.xlu1 %2232, %v763_v27   ;;  %v1678_v26 = vld [vmem:[%s3267_s9 + $0xc8] sm:$0xff]  ;;  %v1136_v27 = vld [vmem:[%s3266_s8 + $0xe0] sm:$0xff] }
  0x53   : > { %802 = vperm.xlu0 %2231, %v760_v28   ;;  %807 = vperm.xlu1 %2232, %v761_v29   ;;  %v1679_v28 = vld [vmem:[%s3267_s9 + $0xd0] sm:$0xff]  ;;  %v1137_v29 = vld [vmem:[%s3266_s8 + $0xe8] sm:$0xff] }
  0x57   : > { %792 = vperm.xlu0 %2231, %v758_v30   ;;  %797 = vperm.xlu1 %2232, %v759_v31   ;;  %v1680_v30 = vld [vmem:[%s3267_s9 + $0xd8] sm:$0xff]  ;;  %v1138_v31 = vld [vmem:[%s3266_s8 + $0xf0] sm:$0xff] }
  0x5b   : > { %782 = vperm.xlu0 %2231, %v756_v32   ;;  %787 = vperm.xlu1 %2232, %v757_v33   ;;  %v1681_v32 = vld [vmem:[%s3267_s9 + $0xe0] sm:$0xff]  ;;  %v1139_v33 = vld [vmem:[%s3266_s8 + $0xf8] sm:$0xff] }
  0x5f   : > { %772 = vperm.xlu0 %2231, %v754_v34   ;;  %777 = vperm.xlu1 %2232, %v755_v35   ;;  %v1682_v34 = vld [vmem:[%s3267_s9 + $0xe8] sm:$0xff]  ;;  %v1683_v35 = vld [vmem:[%s3267_s9 + $0xf0] sm:$0xff] }
  0x63   : > { %1142 = vperm.xlu0 %2231, %v1108_v36   ;;  %1147 = vperm.xlu1 %2232, %v1109_v37   ;;  %v1684_v36 = vld [vmem:[%s3267_s9 + $0xf8] sm:$0xff]  ;;  %v1983_v37 = vld [vmem:[#allocation2] sm:$0x1] }
  0x67   : > { %1152 = vperm.xlu0 %2231, %v1110_v38   ;;  %1157 = vperm.xlu1 %2232, %v1111_v39  }
  0x6b   : > { %1162 = vperm.xlu0 %2231, %v1112_v40   ;;  %1167 = vperm.xlu1 %2232, %v1113_v41  }
  0x6f   : > { %1172 = vperm.xlu0 %2231, %v1114_v42   ;;  %1177 = vperm.xlu1 %2232, %v1115_v43  }
  0x73   : > { %1182 = vperm.xlu0 %2231, %v1116_v44   ;;  %1187 = vperm.xlu1 %2232, %v1117_v45  }
  0x77   : > { %1192 = vperm.xlu0 %2231, %v1118_v46   ;;  %1197 = vperm.xlu1 %2232, %v1119_v47  }
  0x7b   : > { %1202 = vperm.xlu0 %2231, %v1120_v48   ;;  %1207 = vperm.xlu1 %2232, %v1121_v49  }
  0x7f   : > { %1212 = vperm.xlu0 %2231, %v1122_v50   ;;  %1217 = vperm.xlu1 %2232, %v1123_v51  }
  0x83   : > { %1222 = vperm.xlu0 %2231, %v1124_v52   ;;  %1227 = vperm.xlu1 %2232, %v1125_v53  }
  0x87   : > { %1232 = vperm.xlu0 %2231, %v1126_v54   ;;  %1237 = vperm.xlu1 %2232, %v1127_v55  }
  0x8b   : > { %1687 = vperm.xlu0 %2231, %v1653_v56   ;;  %1692 = vperm.xlu1 %2232, %v1654_v57  }
  0x8f   : > { %1697 = vperm.xlu0 %2231, %v1655_v58   ;;  %1702 = vperm.xlu1 %2232, %v1656_v59  }
  0x93   : > { %1707 = vperm.xlu0 %2231, %v1657_v60   ;;  %1712 = vperm.xlu1 %2232, %v1658_v61  }
  0x97   : > { %1717 = vperm.xlu0 %2231, %v1659_v62   ;;  %1722 = vperm.xlu1 %2232, %v1660_v63  }
  0x9b   : > { %1727 = vperm.xlu0 %2231, %v1661_v0   ;;  %1732 = vperm.xlu1 %2232, %v1662_v1  }
  0x9f   : > { %1737 = vperm.xlu0 %2231, %v1663_v2   ;;  %1742 = vperm.xlu1 %2232, %v1664_v3  }
  0xa3   : > { %1747 = vperm.xlu0 %2231, %v1665_v4   ;;  %1752 = vperm.xlu1 %2232, %v1666_v6  }
  0xa6   : > { %v453_v41 = vpop.permute.xlu0 %452  ;;  %v443_v42 = vpop.permute.xlu1 %442 }
  0xa7   : > { %1757 = vperm.xlu0 %2231, %v1667_v7   ;;  %1762 = vperm.xlu1 %2232, %v1668_v8   ;;  %v2238_v7 = vld [vmem:[%s3261_s3] sm:$0xff]   ;;  %v2239_v8 = vld [vmem:[%s3261_s3 + $0x8] sm:$0xff]  }
  0xaa   : > { %v458_v46 = vpop.permute.xlu0 %457  ;;  %v448_v47 = vpop.permute.xlu1 %447 }
  0xab   : > { %1767 = vperm.xlu0 %2231, %v1669_v9   ;;  %1772 = vperm.xlu1 %2232, %v1670_v10   ;;  %v2240_v9 = vld [vmem:[%s3261_s3 + $0x10] sm:$0xff]   ;;  %v2241_v10 = vld [vmem:[%s3261_s3 + $0x18] sm:$0xff]  }
  0xaf   : > { %1242 = vperm.xlu0 %2231, %v1128_v11   ;;  %1777 = vperm.xlu1 %2232, %v1671_v12  }
  0xb3   : > { %1247 = vperm.xlu0 %2231, %v1129_v13   ;;  %1782 = vperm.xlu1 %2232, %v1672_v14  }
  0xb7   : > { %1252 = vperm.xlu0 %2231, %v1130_v15   ;;  %1787 = vperm.xlu1 %2232, %v1673_v16  }
  0xbb   : > { %1257 = vperm.xlu0 %2231, %v1131_v17   ;;  %1792 = vperm.xlu1 %2232, %v1674_v18  }
  0xbf   : > { %1262 = vperm.xlu0 %2231, %v1132_v19   ;;  %1797 = vperm.xlu1 %2232, %v1675_v20   ;;  %v606_v20 = vpop.permute.xlu1 %605 }
  0xc3   : > { %1267 = vperm.xlu0 %2231, %v1133_v21   ;;  %1802 = vperm.xlu1 %2232, %v1676_v22   ;;  %v601_v22 = vpop.permute.xlu0 %600 }
  0xc7   : > { %1272 = vperm.xlu0 %2231, %v1134_v23   ;;  %1807 = vperm.xlu1 %2232, %v1677_v24  }
  0xcb   : > { %1277 = vperm.xlu0 %2231, %v1135_v25   ;;  %1812 = vperm.xlu1 %2232, %v1678_v26   ;;  %v596_v25 = vpop.permute.xlu1 %595 }
  0xcf   : > { %1282 = vperm.xlu0 %2231, %v1136_v27   ;;  %1817 = vperm.xlu1 %2232, %v1679_v28   ;;  %v591_v27 = vpop.permute.xlu0 %590 }
  0xd3   : > { %1287 = vperm.xlu0 %2231, %v1137_v29   ;;  %1822 = vperm.xlu1 %2232, %v1680_v30  }
  0xd7   : > { %1292 = vperm.xlu0 %2231, %v1138_v31   ;;  %1827 = vperm.xlu1 %2232, %v1681_v32  }
  0xdb   : > { %1297 = vperm.xlu0 %2231, %v1139_v33   ;;  %1832 = vperm.xlu1 %2232, %v1682_v34   ;;  %v586_v33 = vpop.permute.xlu1 %585 }
  0xdf   : > { %1837 = vperm.xlu0 %2231, %v1683_v35   ;;  %1842 = vperm.xlu1 %2232, %v1684_v36  }
  0xe3   : > { %1986 = vperm.xlu0 %2231, %v1983_v37  }
  0xf1   : > { %v521_v38 = vpop.f32.mrf.mxu0 }
  0xf2   : > { %v522_v61 = vadd.f32 %v521_v38, %v443_v42  ;;  %v581_v38 = vpop.permute.xlu0 %580 }
  0xf3   : > { %v523_v39 = vpop.f32.mrf.mxu0 }
  0xf4   : > { %v524_v54 = vadd.f32 %v523_v39, %v443_v42  ;;  %v540_v4 = vmax.f32 %v522_v61, 0.0 }
  0xf5   : > { %v525_v40 = vpop.f32.mrf.mxu0 }
  0xf6   : > { %v526_v56 = vadd.f32 %v525_v40, %v448_v47  ;;  %v541_v63 = vmax.f32 %v524_v54, 0.0 }
  0xf7   : > { %v527_v43 = vpop.f32.mrf.mxu0 }
  0xf8   : > { %v528_v49 = vadd.f32 %v527_v43, %v448_v47  ;;  %v542_v1 = vmax.f32 %v526_v56, 0.0 }
  0xf9   : > { %v531_v44 = vpop.f32.mrf.mxu0 }
  0xfa   : > { %v532_v52 = vadd.f32 %v531_v44, %v453_v41  ;;  %v543_v58 = vmax.f32 %v528_v49, 0.0  ;;  %v548_v6 = vpack.c.bf16 %v542_v1, %v540_v4 }
  0xfb   : > { %v533_v45 = vpop.f32.mrf.mxu0 }
  0xfc   : > { %v534_v50 = vadd.f32 %v533_v45, %v453_v41  ;;  %v544_v62 = vmax.f32 %v532_v52, 0.0  ;;  %v549_v3 = vpack.c.bf16 %v543_v58, %v541_v63 }
  0xfd   : > { %v535_v48 = vpop.f32.mrf.mxu0 }
  0xfe   : > { %v536_v51 = vadd.f32 %v535_v48, %v458_v46  ;;  %v545_v59 = vmax.f32 %v534_v50, 0.0  ;;  %v576_v50 = vpop.permute.xlu1 %575 }
  0xff   : > { %v537_v53 = vpop.f32.mrf.mxu0 }
 0x100   : > { %v538_v55 = vadd.f32 %v537_v53, %v458_v46  ;;  %v546_v57 = vmax.f32 %v536_v51, 0.0 }
 0x102   : > { %v547_v60 = vmax.f32 %v538_v55, 0.0  ;;  %v550_v2 = vpack.c.bf16 %v546_v57, %v544_v62  ;;  %v571_v57 = vpop.permute.xlu0 %570 }
 0x104   : > { %v551_v0 = vpack.c.bf16 %v547_v60, %v545_v59 }
 0x106   : > { %653 = vmatprep.subr.bf16.mxu1 %v551_v0 }
 0x107   : > { %654 = vmatpush1.bf16.msra.mxu1 %v550_v2 }
 0x108   : > { %655 = vmatprep.subr.bf16.mxu1 %v549_v3 }
 0x10b   : > { %656 = vmatpush1.bf16.msra.mxu1 %v548_v6 }
 0x10e   : > { %2129 = vmatmul.mubr.msk.bf16.vlgmr.msra.gmra.mxu1 %vm628_vm1, %v2238_v7 }
 0x10f   : > { %683 = vmatprep.mubr.bf16.mxu1 %v2336_v5 }
 0x116   : > { %2130 = vmatmul.mubr.msk.bf16.gmra.mxu1 %vm628_vm1, %v2239_v8 }
 0x117   : > { %693 = vmatprep.mubr.bf16.mxu1 %v2336_v5 }
 0x11e   : > { %2131 = vmatmul.mubr.msk.bf16.gmra.mxu1 %vm628_vm1, %v2240_v9 }
 0x11f   : > { %703 = vmatprep.mubr.bf16.mxu1 %v2336_v5 }
 0x126   : > { %2132 = vmatmul.mubr.msk.bf16.gmra.mxu1 %vm628_vm1, %v2241_v10 }
 0x127   : > { %1478 = vmatprep.mubr.bf16.mxu1 %v2336_v5 }
 0x1ce   : > { %v675_v11 = vpop.f32.mrf.mxu1 }
 0x1cf   : > { %v676_v3 = vadd.f32 %v675_v11, %v571_v57  ;;  %v2243_v11 = vld [vmem:[%s3263_s5 + $0x8] sm:$0xff]  }
 0x1d0   : > { %v677_v12 = vpop.f32.mrf.mxu1 }
 0x1d1   : > { %v678_v60 = vadd.f32 %v677_v12, %v571_v57  ;;  %v714_v10 = vmax.f32 %v676_v3, 0.0  ;;  %v2242_v12 = vld [vmem:[%s3263_s5] sm:$0xff]  }
 0x1d2   : > { %v679_v13 = vpop.f32.mrf.mxu1 }
 0x1d3   : > { %v680_v62 = vadd.f32 %v679_v13, %v576_v50  ;;  %v715_v6 = vmax.f32 %v678_v60, 0.0  ;;  %v2244_v13 = vld [vmem:[%s3263_s5 + $0x10] sm:$0xff]  }
 0x1d4   : > { %v681_v14 = vpop.f32.mrf.mxu1 }
 0x1d5   : > { %v682_v54 = vadd.f32 %v681_v14, %v576_v50  ;;  %v716_v7 = vmax.f32 %v680_v62, 0.0 }
 0x1d6   : > { %v685_v15 = vpop.f32.mrf.mxu1 }
 0x1d7   : > { %v686_v58 = vadd.f32 %v685_v15, %v581_v38  ;;  %v717_v1 = vmax.f32 %v682_v54, 0.0  ;;  %v730_v14 = vpack.c.bf16 %v716_v7, %v714_v10  ;;  %v2245_v15 = vld [vmem:[%s3263_s5 + $0x18] sm:$0xff]  }
 0x1d8   : > { %v687_v16 = vpop.f32.mrf.mxu1 }
 0x1d9   : > { %v688_v47 = vadd.f32 %v687_v16, %v581_v38  ;;  %v718_v4 = vmax.f32 %v686_v58, 0.0  ;;  %v731_v9 = vpack.c.bf16 %v717_v1, %v715_v6  ;;  %v2246_v16 = vld [vmem:[%s3263_s5 + $0x20] sm:$0xff]  }
 0x1da   : > { %v689_v17 = vpop.f32.mrf.mxu1 }
 0x1db   : > { %v690_v51 = vadd.f32 %v689_v17, %v586_v33  ;;  %v719_v61 = vmax.f32 %v688_v47, 0.0  ;;  %v2247_v17 = vld [vmem:[%s3263_s5 + $0x28] sm:$0xff]  }
 0x1dc   : > { %v691_v18 = vpop.f32.mrf.mxu1 }
 0x1dd   : > { %v692_v41 = vadd.f32 %v691_v18, %v586_v33  ;;  %v720_v63 = vmax.f32 %v690_v51, 0.0  ;;  %v2248_v18 = vld [vmem:[%s3263_s5 + $0x30] sm:$0xff]  }
 0x1de   : > { %v695_v19 = vpop.f32.mrf.mxu1 }
 0x1df   : > { %v696_v45 = vadd.f32 %v695_v19, %v591_v27  ;;  %v721_v55 = vmax.f32 %v692_v41, 0.0  ;;  %v732_v8 = vpack.c.bf16 %v720_v63, %v718_v4  ;;  %v2249_v19 = vld [vmem:[%s3263_s5 + $0x38] sm:$0xff]  }
 0x1e0   : > { %v697_v21 = vpop.f32.mrf.mxu1 }
 0x1e1   : > { %v698_v36 = vadd.f32 %v697_v21, %v591_v27  ;;  %v722_v59 = vmax.f32 %v696_v45, 0.0  ;;  %v733_v2 = vpack.c.bf16 %v721_v55, %v719_v61  ;;  %v2806_v21 = vpop.permute.xlu1 %847 }
 0x1e2   : > { %v699_v23 = vpop.f32.mrf.mxu1 }
 0x1e3   : > { %v700_v39 = vadd.f32 %v699_v23, %v596_v25  ;;  %v723_v48 = vmax.f32 %v698_v36, 0.0 }
 0x1e4   : > { %v701_v24 = vpop.f32.mrf.mxu1 }
 0x1e5   : > { %v702_v30 = vadd.f32 %v701_v24, %v596_v25  ;;  %v724_v52 = vmax.f32 %v700_v39, 0.0  ;;  %v2810_v23 = vpop.permute.xlu1 %837 }
 0x1e6   : > { %v705_v26 = vpop.f32.mrf.mxu1 }
 0x1e7   : > { %v706_v34 = vadd.f32 %v705_v26, %v601_v22  ;;  %v725_v42 = vmax.f32 %v702_v30, 0.0  ;;  %v734_v0 = vpack.c.bf16 %v724_v52, %v722_v59 }
 0x1e8   : > { %v707_v28 = vpop.f32.mrf.mxu1 }
 0x1e9   : > { %v708_v31 = vadd.f32 %v707_v28, %v601_v22  ;;  %v726_v46 = vmax.f32 %v706_v34, 0.0  ;;  %v735_v56 = vpack.c.bf16 %v725_v42, %v723_v48  ;;  %v2814_v25 = vpop.permute.xlu1 %827 }
 0x1ea   : > { %v709_v29 = vpop.f32.mrf.mxu1 }
 0x1eb   : > { %v710_v32 = vadd.f32 %v709_v29, %v606_v20  ;;  %v727_v43 = vmax.f32 %v708_v31, 0.0 }
 0x1ec   : > { %v711_v35 = vpop.f32.mrf.mxu1 }
 0x1ed   : > { %v712_v37 = vadd.f32 %v711_v35, %v606_v20  ;;  %v728_v40 = vmax.f32 %v710_v32, 0.0  ;;  %v2804_v20 = vpop.permute.xlu0 %842  ;;  %v2818_v27 = vpop.permute.xlu1 %817 }
 0x1ef   : > { %v729_v44 = vmax.f32 %v712_v37, 0.0  ;;  %v736_v53 = vpack.c.bf16 %v728_v40, %v726_v46 }
 0x1f1   : > { %v737_v49 = vpack.c.bf16 %v729_v44, %v727_v43  ;;  %v2808_v22 = vpop.permute.xlu0 %832  ;;  %v2822_v29 = vpop.permute.xlu1 %807 }
 0x1f3   : > { %923 = vmatprep.subr.bf16.mxu0 %v737_v49 }
 0x1f4   : > { %924 = vmatpush1.bf16.msra.mxu0 %v736_v53 }
 0x1f5   : > { %925 = vmatprep.subr.bf16.mxu0 %v735_v56  ;;  %v2812_v24 = vpop.permute.xlu0 %822  ;;  %v2826_v31 = vpop.permute.xlu1 %797 }
 0x1f8   : > { %926 = vmatpush1.bf16.msra.mxu0 %v734_v0 }
 0x1f9   : > { %927 = vmatprep.subr.bf16.mxu0 %v733_v2  ;;  %v2816_v26 = vpop.permute.xlu0 %812  ;;  %v788_v33 = vpop.permute.xlu1 %787 }
 0x1fc   : > { %928 = vmatpush1.bf16.msra.mxu0 %v732_v8 }
 0x1fd   : > { %929 = vmatprep.subr.bf16.mxu0 %v731_v9  ;;  %v2820_v28 = vpop.permute.xlu0 %802  ;;  %v778_v38 = vpop.permute.xlu1 %777 }
 0x200   : > { %930 = vmatpush1.bf16.msra.mxu0 %v730_v14 }
 0x201   : > { %v2824_v30 = vpop.permute.xlu0 %792 }
 0x203   : > { %2141 = vmatmul.mubr.msk.bf16.vlgmr.msra.gmra.mxu0 %vm890_vm2, %v2242_v12 }
 0x204   : > { %957 = vmatprep.mubr.bf16.mxu0 %v2336_v5 }
 0x205   : > { %v783_v32 = vpop.permute.xlu0 %782 }
 0x209   : > { %v773_v35 = vpop.permute.xlu0 %772 }
 0x20b   : > { %2142 = vmatmul.mubr.msk.bf16.gmra.mxu0 %vm890_vm2, %v2243_v11 }
 0x20c   : > { %967 = vmatprep.mubr.bf16.mxu0 %v2336_v5 }
 0x213   : > { %2143 = vmatmul.mubr.msk.bf16.gmra.mxu0 %vm890_vm2, %v2244_v13 }
 0x214   : > { %977 = vmatprep.mubr.bf16.mxu0 %v2336_v5 }
 0x21b   : > { %2144 = vmatmul.mubr.msk.bf16.gmra.mxu0 %vm890_vm2, %v2245_v15 }
 0x21c   : > { %987 = vmatprep.mubr.bf16.mxu0 %v2336_v5 }
 0x223   : > { %2145 = vmatmul.mubr.msk.bf16.gmra.mxu0 %vm890_vm2, %v2246_v16 }
 0x224   : > { %997 = vmatprep.mubr.bf16.mxu0 %v2336_v5 }
 0x22b   : > { %2146 = vmatmul.mubr.msk.bf16.gmra.mxu0 %vm890_vm2, %v2247_v17 }
 0x22c   : > { %1007 = vmatprep.mubr.bf16.mxu0 %v2336_v5 }
 0x233   : > { %2147 = vmatmul.mubr.msk.bf16.gmra.mxu0 %vm890_vm2, %v2248_v18 }
 0x234   : > { %1017 = vmatprep.mubr.bf16.mxu0 %v2336_v5 }
 0x23b   : > { %2148 = vmatmul.mubr.msk.bf16.gmra.mxu0 %vm890_vm2, %v2249_v19 }
 0x23c   : > { %1428 = vmatprep.mubr.bf16.mxu0 %v2336_v5 }
 0x2c3   : > { %v949_v34 = vpop.f32.mrf.mxu0 }
 0x2c4   : > { %v950_v37 = vadd.f32 %v949_v34, %v773_v35 }
 0x2c5   : > { %v951_v36 = vpop.f32.mrf.mxu0 }
 0x2c6   : > { %v952_v40 = vadd.f32 %v951_v36, %v773_v35  ;;  %v1028_v43 = vmax.f32 %v950_v37, 0.0 }
 0x2c7   : > { %v953_v39 = vpop.f32.mrf.mxu0 }
 0x2c8   : > { %v954_v41 = vadd.f32 %v953_v39, %v778_v38  ;;  %v1029_v47 = vmax.f32 %v952_v40, 0.0 }
 0x2c9   : > { %v955_v42 = vpop.f32.mrf.mxu0 }
 0x2ca   : > { %v1030_v44 = vmax.f32 %v954_v41, 0.0  ;;  %v956_v45 = vadd.f32 %v955_v42, %v778_v38 }
 0x2cb   : > { %v959_v46 = vpop.f32.mrf.mxu0 }
 0x2cc   : > { %v2828_v48 = vpack.c.bf16 %v1030_v44, %v1028_v43  ;;  %v1031_v49 = vmax.f32 %v956_v45, 0.0  ;;  %v960_v52 = vadd.f32 %v959_v46, %v783_v32 }
 0x2cd   : > { %v961_v50 = vpop.f32.mrf.mxu0 }
 0x2ce   : > { %v2830_v51 = vpack.c.bf16 %v1031_v49, %v1029_v47  ;;  %v962_v54 = vadd.f32 %v961_v50, %v783_v32  ;;  %v1032_v57 = vmax.f32 %v960_v52, 0.0 }
 0x2cf   : > { %v963_v53 = vpop.f32.mrf.mxu0 }
 0x2d0   : > { %v964_v55 = vadd.f32 %v963_v53, %v788_v33  ;;  %v1033_v61 = vmax.f32 %v962_v54, 0.0 }
 0x2d1   : > { %v965_v56 = vpop.f32.mrf.mxu0 }
 0x2d2   : > { %v1034_v58 = vmax.f32 %v964_v55, 0.0  ;;  %v966_v59 = vadd.f32 %v965_v56, %v788_v33 }
 0x2d3   : > { %v2832_v60 = vpop.f32.mrf.mxu0 }
 0x2d4   : > { %v2834_v62 = vpack.c.bf16 %v1034_v58, %v1032_v57  ;;  %v1035_v63 = vmax.f32 %v966_v59, 0.0 }
 0x2d5   : > { %v2836_v0 = vpop.f32.mrf.mxu0 }
 0x2d6   : > { %v2838_v1 = vpack.c.bf16 %v1035_v63, %v1033_v61 }
 0x2d7   : > { %v2840_v2 = vpop.f32.mrf.mxu0 }
 0x2d9   : > { %v2842_v3 = vpop.f32.mrf.mxu0 }
 0x2db   : > { %v2844_v4 = vpop.f32.mrf.mxu0 }
 0x2dd   : > { %v981_v6 = vpop.f32.mrf.mxu0 }
 0x2df   : > { %v2846_v7 = vpop.f32.mrf.mxu0 }
 0x2e1   : > { %v985_v8 = vpop.f32.mrf.mxu0 }
 0x2e3   : > { %v989_v9 = vpop.f32.mrf.mxu0 }
 0x2e5   : > { %v991_v10 = vpop.f32.mrf.mxu0 }
 0x2e7   : > { %v993_v14 = vpop.f32.mrf.mxu0 }
 0x2e9   : > { %v995_v12 = vpop.f32.mrf.mxu0 }
 0x2eb   : > { %v999_v11 = vpop.f32.mrf.mxu0 }
 0x2ec   : > { %v1000_v59 = vadd.f32 %v999_v11, %v2812_v24 }
 0x2ed   : > { %v1001_v13 = vpop.f32.mrf.mxu0 }
 0x2ee   : > { %v1002_v53 = vadd.f32 %v1001_v13, %v2812_v24  ;;  %v982_v24 = vadd.f32 %v981_v6, %v2820_v28  ;;  %v972_v6 = vadd.f32 %v2836_v0, %v2824_v30 }
 0x2ef   : > { %v1003_v15 = vpop.f32.mrf.mxu0 }
 0x2f0   : > { %v1004_v55 = vadd.f32 %v1003_v15, %v2814_v25  ;;  %v1049_v63 = vmax.f32 %v1002_v53, 0.0  ;;  %v1148_v53 = vpop.permute.xlu1 %1147 }
 0x2f1   : > { %v1005_v16 = vpop.f32.mrf.mxu0 }
 0x2f2   : > { %v1006_v45 = vadd.f32 %v1005_v16, %v2814_v25  ;;  %v994_v25 = vadd.f32 %v993_v14, %v2818_v27  ;;  %v1050_v13 = vmax.f32 %v1004_v55, 0.0 }
 0x2f3   : > { %v1009_v17 = vpop.f32.mrf.mxu0 }
 0x2f4   : > { %v1010_v50 = vadd.f32 %v1009_v17, %v2808_v22 }
 0x2f5   : > { %v1011_v18 = vpop.f32.mrf.mxu0 }
 0x2f6   : > { %v1012_v41 = vadd.f32 %v1011_v18, %v2808_v22  ;;  %v1052_v61 = vmax.f32 %v1010_v50, 0.0  ;;  %v992_v22 = vadd.f32 %v991_v10, %v2816_v26  ;;  %v990_v18 = vadd.f32 %v989_v9, %v2816_v26  ;;  %v2265_v50 = vld [vmem:[%s3265_s7 + $0x78] sm:$0xff]  }
 0x2f7   : > { %v1013_v19 = vpop.f32.mrf.mxu0  ;;  %v984_v10 = vadd.f32 %v2846_v7, %v2822_v29  ;;  %v980_v26 = vadd.f32 %v2844_v4, %v2820_v28  ;;  %v1037_v4 = vmax.f32 %v972_v6, 0.0 }
 0x2f8   : > { %v1014_v43 = vadd.f32 %v1013_v19, %v2810_v23  ;;  %v1053_v54 = vmax.f32 %v1012_v41, 0.0  ;;  %v1048_v19 = vmax.f32 %v1000_v59, 0.0  ;;  %v1045_v11 = vmax.f32 %v992_v22, 0.0  ;;  %v2257_v41 = vld [vmem:[%s3265_s7 + $0x40] sm:$0xff]  }
 0x2f9   : > { %v1015_v32 = vpop.f32.mrf.mxu0  ;;  %v1044_v9 = vmax.f32 %v990_v18, 0.0  ;;  %v1042_v7 = vmax.f32 %v984_v10, 0.0  ;;  %v1040_v28 = vmax.f32 %v980_v26, 0.0 }
 0x2fa   : > { %v1016_v36 = vadd.f32 %v1015_v32, %v2810_v23  ;;  %v1054_v56 = vmax.f32 %v1014_v43, 0.0  ;;  %v1051_v23 = vmax.f32 %v1006_v45, 0.0  ;;  %v1070_v14 = vpack.c.bf16 %v1050_v13, %v1048_v19  ;;  %v2259_v43 = vld [vmem:[%s3265_s7 + $0x48] sm:$0xff]   ;;  %v2261_v45 = vld [vmem:[%s3265_s7 + $0x58] sm:$0xff]  }
 0x2fb   : > { %v1019_v33 = vpop.f32.mrf.mxu0 }
 0x2fc   : > { %v1020_v39 = vadd.f32 %v1019_v33, %v2804_v20  ;;  %v1055_v46 = vmax.f32 %v1016_v36, 0.0  ;;  %v1072_v15 = vpack.c.bf16 %v1054_v56, %v1052_v61  ;;  %v1071_v17 = vpack.c.bf16 %v1051_v23, %v1049_v63 }
 0x2fd   : > { %v1021_v34 = vpop.f32.mrf.mxu0 }
 0x2fe   : > { %v1022_v37 = vadd.f32 %v1021_v34, %v2804_v20  ;;  %v1056_v52 = vmax.f32 %v1020_v39, 0.0  ;;  %v1073_v58 = vpack.c.bf16 %v1055_v46, %v1053_v54  ;;  %v1041_v34 = vmax.f32 %v982_v24, 0.0  ;;  %v2262_v46 = vld [vmem:[%s3265_s7 + $0x60] sm:$0xff]  }
 0x2ff   : > { %v1023_v35 = vpop.f32.mrf.mxu0 }
 0x300   : > { %v1024_v38 = vadd.f32 %v1023_v35, %v2806_v21  ;;  %v1057_v47 = vmax.f32 %v1022_v37, 0.0  ;;  %v970_v37 = vadd.f32 %v2832_v60, %v2824_v30  ;;  %v2250_v30 = vld [vmem:[%s3265_s7] sm:$0xff]   ;;  %v2251_v60 = vld [vmem:[%s3265_s7 + $0x28] sm:$0xff]  }
 0x301   : > { %v1025_v40 = vpop.f32.mrf.mxu0 }
 0x302   : > { %v1026_v42 = vadd.f32 %v1025_v40, %v2806_v21  ;;  %v1058_v44 = vmax.f32 %v1024_v38, 0.0  ;;  %v996_v21 = vadd.f32 %v995_v12, %v2818_v27  ;;  %v986_v12 = vadd.f32 %v985_v8, %v2822_v29 }
 0x303   : > { %v1046_v27 = vmax.f32 %v994_v25, 0.0  ;;  %v976_v8 = vadd.f32 %v2842_v3, %v2826_v31  ;;  %v974_v29 = vadd.f32 %v2840_v2, %v2826_v31  ;;  %v1066_v38 = vpack.c.bf16 %v1042_v7, %v1040_v28  ;;  %v2256_v2 = vld [vmem:[%s3265_s7 + $0x18] sm:$0xff]  }
 0x304   : > { %v1059_v49 = vmax.f32 %v1026_v42, 0.0  ;;  %v1074_v57 = vpack.c.bf16 %v1058_v44, %v1056_v52  ;;  %v1047_v16 = vmax.f32 %v996_v21, 0.0  ;;  %v1043_v32 = vmax.f32 %v986_v12, 0.0  ;;  %v2258_v42 = vld [vmem:[%s3265_s7 + $0x20] sm:$0xff]   ;;  %v2260_v44 = vld [vmem:[%s3265_s7 + $0x50] sm:$0xff]   ;;  %v1143_v52 = vpop.permute.xlu0 %1142 }
 0x305   : > { %v1068_v35 = vpack.c.bf16 %v1046_v27, %v1044_v9  ;;  %v1039_v3 = vmax.f32 %v976_v8, 0.0  ;;  %v1038_v0 = vmax.f32 %v974_v29, 0.0  ;;  %v1036_v40 = vmax.f32 %v970_v37, 0.0 }
 0x306   : > { %v1075_v20 = vpack.c.bf16 %v1059_v49, %v1057_v47  ;;  %v1069_v33 = vpack.c.bf16 %v1047_v16, %v1045_v11  ;;  %v1067_v36 = vpack.c.bf16 %v1043_v32, %v1041_v34  ;;  %v2263_v47 = vld [vmem:[%s3265_s7 + $0x68] sm:$0xff]   ;;  %v2264_v49 = vld [vmem:[%s3265_s7 + $0x70] sm:$0xff]  }
 0x307   : > { %v1065_v39 = vpack.c.bf16 %v1039_v3, %v1037_v4  ;;  %v1064_v31 = vpack.c.bf16 %v1038_v0, %v1036_v40 }
 0x308   : > { %1396 = vmatprep.subr.bf16.mxu0 %v1075_v20  ;;  %2174 = vmatprep.subr.bf16.mxu1 %v1075_v20  ;;  %v1153_v54 = vpop.permute.xlu0 %1152  ;;  %v2948_v20 = vpop.permute.xlu1 %1157 }
 0x309   : > { %1397 = vmatpush1.bf16.msra.mxu0 %v1074_v57  ;;  %2182 = vmatpush1.bf16.msra.mxu1 %v1074_v57 }
 0x30a   : > { %1398 = vmatprep.subr.bf16.mxu0 %v1073_v58  ;;  %2175 = vmatprep.subr.bf16.mxu1 %v1073_v58 }
 0x30c   : > { %v2950_v55 = vpop.permute.xlu0 %1162  ;;  %v2952_v56 = vpop.permute.xlu1 %1167 }
 0x30d   : > { %1399 = vmatpush1.bf16.msra.mxu0 %v1072_v15  ;;  %2183 = vmatpush1.bf16.msra.mxu1 %v1072_v15 }
 0x30e   : > { %1400 = vmatprep.subr.bf16.mxu0 %v1071_v17  ;;  %2176 = vmatprep.subr.bf16.mxu1 %v1071_v17 }
 0x310   : > { %v2954_v57 = vpop.permute.xlu0 %1172  ;;  %v2956_v21 = vpop.permute.xlu1 %1177 }
 0x311   : > { %1401 = vmatpush1.bf16.msra.mxu0 %v1070_v14  ;;  %2184 = vmatpush1.bf16.msra.mxu1 %v1070_v14 }
 0x312   : > { %1402 = vmatprep.subr.bf16.mxu0 %v1069_v33  ;;  %2177 = vmatprep.subr.bf16.mxu1 %v1069_v33 }
 0x314   : > { %v2958_v23 = vpop.permute.xlu0 %1182 }
 0x315   : > { %1403 = vmatpush1.bf16.msra.mxu0 %v1068_v35  ;;  %2185 = vmatpush1.bf16.msra.mxu1 %v1068_v35 }
 0x316   : > { %1404 = vmatprep.subr.bf16.mxu0 %v1067_v36  ;;  %2178 = vmatprep.subr.bf16.mxu1 %v1067_v36 }
 0x318   : > { %v2962_v58 = vpop.permute.xlu0 %1192 }
 0x319   : > { %1405 = vmatpush1.bf16.msra.mxu0 %v1066_v38  ;;  %2186 = vmatpush1.bf16.msra.mxu1 %v1066_v38 }
 0x31a   : > { %1406 = vmatprep.subr.bf16.mxu0 %v1065_v39  ;;  %2179 = vmatprep.subr.bf16.mxu1 %v1065_v39 }
 0x31c   : > { %v2966_v61 = vpop.permute.xlu0 %1202 }
 0x31d   : > { %1407 = vmatpush1.bf16.msra.mxu0 %v1064_v31  ;;  %2187 = vmatpush1.bf16.msra.mxu1 %v1064_v31 }
 0x31e   : > { %1408 = vmatprep.subr.bf16.mxu0 %v2838_v1  ;;  %2180 = vmatprep.subr.bf16.mxu1 %v2838_v1  ;;  %v2255_v1 = vld [vmem:[%s3265_s7 + $0x38] sm:$0xff]  }
 0x320   : > { %v2970_v63 = vpop.permute.xlu0 %1212 }
 0x321   : > { %1409 = vmatpush1.bf16.msra.mxu0 %v2834_v62  ;;  %2188 = vmatpush1.bf16.msra.mxu1 %v2834_v62  ;;  %v2253_v62 = vld [vmem:[%s3265_s7 + $0x30] sm:$0xff]  }
 0x322   : > { %1410 = vmatprep.subr.bf16.mxu0 %v2830_v51  ;;  %2181 = vmatprep.subr.bf16.mxu1 %v2830_v51  ;;  %v2252_v51 = vld [vmem:[%s3265_s7 + $0x8] sm:$0xff]  }
 0x324   : > { %v2974_v13 = vpop.permute.xlu0 %1222 }
 0x325   : > { %1411 = vmatpush1.bf16.msra.mxu0 %v2828_v48  ;;  %2189 = vmatpush1.bf16.msra.mxu1 %v2828_v48  ;;  %v2254_v48 = vld [vmem:[%s3265_s7 + $0x10] sm:$0xff]  }
 0x328   : > { %1429 = vmatmul.mubr.bf16.vlgmr.msra.gmra.mxu0 %v2250_v30  ;;  %1479 = vmatmul.mubr.bf16.vlgmr.msra.gmra.mxu1 %v2251_v60  ;;  %v2978_v12 = vpop.permute.xlu0 %1232 }
 0x329   : > { %1438 = vmatprep.mubr.bf16.mxu0 %v2336_v5  ;;  %1488 = vmatprep.mubr.bf16.mxu1 %v2336_v5  ;;  %3285 = vst [vmem:[#allocation7_spill] sm:$0xff] %v2978_v12 }
 0x32c   : > { %v2982_v17 = vpop.permute.xlu0 %1687 }
 0x330   : > { %1439 = vmatmul.mubr.bf16.gmra.mxu0 %v2252_v51  ;;  %1489 = vmatmul.mubr.bf16.gmra.mxu1 %v2253_v62  ;;  %v2986_v19 = vpop.permute.xlu0 %1697 }
 0x331   : > { %1448 = vmatprep.mubr.bf16.mxu0 %v2336_v5  ;;  %1498 = vmatprep.mubr.bf16.mxu1 %v2336_v5 }
 0x334   : > { %v2990_v11 = vpop.permute.xlu0 %1707 }
 0x338   : > { %1449 = vmatmul.mubr.bf16.gmra.mxu0 %v2254_v48  ;;  %1499 = vmatmul.mubr.bf16.gmra.mxu1 %v2255_v1  ;;  %v2994_v27 = vpop.permute.xlu0 %1717 }
 0x339   : > { %1458 = vmatprep.mubr.bf16.mxu0 %v2336_v5  ;;  %1508 = vmatprep.mubr.bf16.mxu1 %v2336_v5 }
 0x33c   : > { %v2998_v8 = vpop.permute.xlu0 %1727 }
 0x340   : > { %1459 = vmatmul.mubr.bf16.gmra.mxu0 %v2256_v2  ;;  %1509 = vmatmul.mubr.bf16.gmra.mxu1 %v2257_v41  ;;  %v3002_v33 = vpop.permute.xlu0 %1737 }
 0x341   : > { %1468 = vmatprep.mubr.bf16.mxu0 %v2336_v5  ;;  %1518 = vmatprep.mubr.bf16.mxu1 %v2336_v5 }
 0x344   : > { %v3006_v9 = vpop.permute.xlu0 %1747 }
 0x348   : > { %1469 = vmatmul.mubr.bf16.gmra.mxu0 %v2258_v42  ;;  %1519 = vmatmul.mubr.bf16.gmra.mxu1 %v2259_v43  ;;  %v3012_v7 = vpop.permute.xlu0 %1757 }
 0x349   : > { %1528 = vmatprep.mubr.bf16.mxu1 %v2336_v5  ;;  %3287 = vst [vmem:[#allocation9_spill] sm:$0xff] %v3012_v7 }
 0x34c   : > { %v3022_v38 = vpop.permute.xlu0 %1767 }
 0x34d   : > { %3289 = vst [vmem:[#allocation11_spill] sm:$0xff] %v3022_v38 }
 0x350   : > { %1529 = vmatmul.mubr.bf16.gmra.mxu1 %v2260_v44  ;;  %v3032_v48 = vpop.permute.xlu0 %1242 }
 0x351   : > { %1538 = vmatprep.mubr.bf16.mxu1 %v2336_v5  ;;  %3291 = vst [vmem:[#allocation13_spill] sm:$0xff] %v3032_v48 }
 0x358   : > { %1539 = vmatmul.mubr.bf16.gmra.mxu1 %v2261_v45 }
 0x359   : > { %1548 = vmatprep.mubr.bf16.mxu1 %v2336_v5 }
 0x360   : > { %1549 = vmatmul.mubr.bf16.gmra.mxu1 %v2262_v46 }
 0x361   : > { %1558 = vmatprep.mubr.bf16.mxu1 %v2336_v5 }
 0x368   : > { %1559 = vmatmul.mubr.bf16.gmra.mxu1 %v2263_v47 }
 0x369   : > { %1568 = vmatprep.mubr.bf16.mxu1 %v2336_v5 }
 0x370   : > { %1569 = vmatmul.mubr.bf16.gmra.mxu1 %v2264_v49 }
 0x371   : > { %1578 = vmatprep.mubr.bf16.mxu1 %v2336_v5  ;;  %v2960_v5 = vpop.permute.xlu1 %1187 }
 0x375   : > { %v2964_v59 = vpop.permute.xlu1 %1197 }
 0x378   : > { %1579 = vmatmul.mubr.bf16.gmra.mxu1 %v2265_v50 }
 0x379   : > { %v2968_v22 = vpop.permute.xlu1 %1207 }
 0x37d   : > { %v2972_v25 = vpop.permute.xlu1 %1217 }
 0x381   : > { %v2976_v15 = vpop.permute.xlu1 %1227 }
 0x385   : > { %v2980_v16 = vpop.permute.xlu1 %1237 }
 0x386   : > { %3286 = vst [vmem:[#allocation8_spill] sm:$0xff] %v2980_v16 }
 0x389   : > { %v2984_v18 = vpop.permute.xlu1 %1692 }
 0x38d   : > { %v2988_v24 = vpop.permute.xlu1 %1702 }
 0x391   : > { %v2992_v10 = vpop.permute.xlu1 %1712 }
 0x395   : > { %v2996_v14 = vpop.permute.xlu1 %1722 }
 0x399   : > { %v3000_v32 = vpop.permute.xlu1 %1732 }
 0x39d   : > { %v3004_v26 = vpop.permute.xlu1 %1742 }
 0x3a1   : > { %v3008_v6 = vpop.permute.xlu1 %1752 }
 0x3a5   : > { %v3016_v36 = vpop.permute.xlu1 %1762 }
 0x3a6   : > { %3288 = vst [vmem:[#allocation10_spill] sm:$0xff] %v3016_v36 }
 0x3a9   : > { %v3026_v31 = vpop.permute.xlu1 %1772 }
 0x3aa   : > { %3290 = vst [vmem:[#allocation12_spill] sm:$0xff] %v3026_v31 }
 0x3ad   : > { %v3036_v42 = vpop.permute.xlu1 %1777 }
 0x3ae   : > { %3292 = vst [vmem:[#allocation14_spill] sm:$0xff] %v3036_v42 }
 0x3e8   : > { %v1430_v34 = vpop.f32.mrf.mxu0  ;;  %v3010_v29 = vpop.f32.mrf.mxu1 }
 0x3e9   : > { %v1431_v43 = vadd.f32 %v1430_v34, %v1143_v52 }
 0x3ea   : > { %v1432_v35 = vpop.f32.mrf.mxu0  ;;  %v3014_v3 = vpop.f32.mrf.mxu1 }
 0x3eb   : > { %v1433_v49 = vadd.f32 %v1432_v35, %v1143_v52  ;;  %v1589_v48 = vmax.f32 %v1431_v43, 0.0  ;;  %v3049_v52 = vpop.permute.xlu1 %1782 }
 0x3ec   : > { %v1434_v37 = vpop.f32.mrf.mxu0  ;;  %v3018_v28 = vpop.f32.mrf.mxu1  ;;  %3294 = vst [vmem:[#allocation16_spill] sm:$0xff] %v3049_v52 }
 0x3ed   : > { %v1435_v1 = vadd.f32 %v1434_v37, %v1148_v53  ;;  %v3043_v37 = vpop.permute.xlu0 %1247 }
 0x3ee   : > { %v1436_v4 = vpop.f32.mrf.mxu0  ;;  %v3020_v0 = vpop.f32.mrf.mxu1  ;;  %3293 = vst [vmem:[#allocation15_spill] sm:$0xff] %v3043_v37 }
 0x3ef   : > { %v1437_v44 = vadd.f32 %v1436_v4, %v1148_v53  ;;  %v1591_v50 = vmax.f32 %v1435_v1, 0.0 }
 0x3f0   : > { %v1440_v39 = vpop.f32.mrf.mxu0  ;;  %v3024_v40 = vpop.f32.mrf.mxu1 }
 0x3f1   : > { %v1441_v45 = vadd.f32 %v1440_v39, %v1153_v54  ;;  %v1592_v7 = vmax.f32 %v1437_v44, 0.0  ;;  %v1847_v35 = vmul.f32 %v2984_v18, %v1591_v50 }
 0x3f2   : > { %v1442_v30 = vpop.f32.mrf.mxu0  ;;  %v3028_v60 = vpop.f32.mrf.mxu1 }
 0x3f3   : > { %v1443_v31 = vadd.f32 %v1442_v30, %v1153_v54  ;;  %v1593_v12 = vmax.f32 %v1441_v45, 0.0  ;;  %v1590_v54 = vmax.f32 %v1433_v49, 0.0 }
 0x3f4   : > { %v1444_v51 = vpop.f32.mrf.mxu0  ;;  %v3030_v62 = vpop.f32.mrf.mxu1 }
 0x3f5   : > { %v1445_v38 = vadd.f32 %v1444_v51, %v2948_v20  ;;  %v1594_v30 = vmax.f32 %v1443_v31, 0.0 }
 0x3f6   : > { %v1446_v2 = vpop.f32.mrf.mxu0  ;;  %v3034_v41 = vpop.f32.mrf.mxu1 }
 0x3f7   : > { %v1447_v34 = vadd.f32 %v1446_v2, %v2948_v20  ;;  %v1595_v51 = vmax.f32 %v1445_v38, 0.0  ;;  %v1845_v20 = vmul.f32 %v2982_v17, %v1589_v48  ;;  %v1848_v2 = vmul.f32 %v2984_v18, %v1592_v7  ;;  %v3062_v38 = vpop.permute.xlu0 %1252 }
 0x3f8   : > { %v1450_v46 = vpop.f32.mrf.mxu0  ;;  %v3038_v47 = vpop.f32.mrf.mxu1  ;;  %3295 = vst [vmem:[#allocation17_spill] sm:$0xff] %v3062_v38 }
 0x3f9   : > { %v1451_v53 = vadd.f32 %v1450_v46, %v2950_v55  ;;  %v1849_v46 = vmul.f32 %v2986_v19, %v1593_v12  ;;  %v1596_v42 = vmax.f32 %v1447_v34, 0.0  ;;  %v1851_v18 = vmul.f32 %v2988_v24, %v1595_v51 }
 0x3fa   : > { %v1452_v16 = vpop.f32.mrf.mxu0  ;;  %v3041_v36 = vpop.f32.mrf.mxu1 }
 0x3fb   : > { %v1453_v1 = vadd.f32 %v1452_v16, %v2950_v55  ;;  %v1597_v52 = vmax.f32 %v1451_v53, 0.0  ;;  %v1846_v55 = vmul.f32 %v2982_v17, %v1590_v54  ;;  %v1909_v16 = vadd.f32 %v1847_v35, %v1845_v20 }
 0x3fc   : > { %v1454_v4 = vpop.f32.mrf.mxu0  ;;  %v3047_v39 = vpop.f32.mrf.mxu1  ;;  %v1852_v17 = vmul.f32 %v2988_v24, %v1596_v42 }
 0x3fd   : > { %v1455_v43 = vadd.f32 %v1454_v4, %v2952_v56  ;;  %v1850_v4 = vmul.f32 %v2986_v19, %v1594_v30  ;;  %v1598_v7 = vmax.f32 %v1453_v1, 0.0  ;;  %v1910_v37 = vadd.f32 %v1909_v16, %v1849_v46  ;;  %v3082_v24 = vpop.permute.xlu0 %1257 }
 0x3fe   : > { %v1456_v44 = vpop.f32.mrf.mxu0  ;;  %v3054_v45 = vpop.f32.mrf.mxu1  ;;  %v1853_v54 = vmul.f32 %v2990_v11, %v1597_v52 }
 0x3ff   : > { %v1457_v49 = vadd.f32 %v1456_v44, %v2952_v56  ;;  %v1599_v12 = vmax.f32 %v1455_v43, 0.0  ;;  %v3070_v56 = vpop.permute.xlu1 %1787  ;;  %v1946_v44 = vadd.f32 %v1848_v2, %v1846_v55  ;;  %v1911_v43 = vadd.f32 %v1910_v37, %v1851_v18 }
 0x400   : > { %v1460_v50 = vpop.f32.mrf.mxu0  ;;  %v3060_v31 = vpop.f32.mrf.mxu1 }
 0x401   : > { %v1461_v48 = vadd.f32 %v1460_v50, %v2954_v57  ;;  %v1600_v19 = vmax.f32 %v1457_v49, 0.0  ;;  %v1947_v51 = vadd.f32 %v1946_v44, %v1850_v4  ;;  %v1854_v50 = vmul.f32 %v2990_v11, %v1598_v7 }
 0x402   : > { %v1462_v34 = vpop.f32.mrf.mxu0  ;;  %v3068_v53 = vpop.f32.mrf.mxu1  ;;  %v1855_v2 = vmul.f32 %v2992_v10, %v1599_v12  ;;  %v1912_v16 = vadd.f32 %v1911_v43, %v1853_v54  ;;  %v1481_v12 = vadd.f32 %v3010_v29, %v2962_v58 }
 0x403   : > { %v1463_v38 = vadd.f32 %v1462_v34, %v2954_v57  ;;  %v1601_v35 = vmax.f32 %v1461_v48, 0.0  ;;  %v1948_v49 = vadd.f32 %v1947_v51, %v1852_v17  ;;  %v1856_v4 = vmul.f32 %v2992_v10, %v1600_v19  ;;  %v3089_v11 = vpop.permute.xlu1 %1792 }
 0x404   : > { %v1464_v30 = vpop.f32.mrf.mxu0  ;;  %v3075_v20 = vpop.f32.mrf.mxu1  ;;  %v1913_v44 = vadd.f32 %v1912_v16, %v1855_v2  ;;  %v1485_v51 = vadd.f32 %v3018_v28, %v2964_v59 }
 0x405   : > { %v1465_v1 = vadd.f32 %v1464_v30, %v2956_v21  ;;  %v1602_v46 = vmax.f32 %v1463_v38, 0.0  ;;  %v1857_v48 = vmul.f32 %v2994_v27, %v1601_v35  ;;  %v1949_v34 = vadd.f32 %v1948_v49, %v1854_v50 }
 0x406   : > { %v1466_v55 = vpop.f32.mrf.mxu0  ;;  %v3080_v57 = vpop.f32.mrf.mxu1  ;;  %v1483_v30 = vadd.f32 %v3014_v3, %v2962_v58  ;;  %v1487_v58 = vadd.f32 %v3020_v0, %v2964_v59  ;;  %v1491_v3 = vadd.f32 %v3024_v40, %v2966_v61  ;;  %v1493_v59 = vadd.f32 %v3028_v60, %v2966_v61 }
 0x407   : > { %v1603_v42 = vmax.f32 %v1465_v1, 0.0  ;;  %v1467_v52 = vadd.f32 %v1466_v55, %v2956_v21  ;;  %v1858_v21 = vmul.f32 %v2994_v27, %v1602_v46  ;;  %v1950_v1 = vadd.f32 %v1949_v34, %v1856_v4  ;;  %v3105_v27 = vpop.permute.xlu0 %1262 }
 0x408   : > { %v1470_v37 = vpop.f32.mrf.mxu0  ;;  %v3087_v18 = vpop.f32.mrf.mxu1  ;;  %v1914_v29 = vadd.f32 %v1913_v44, %v1857_v48  ;;  %v1495_v0 = vadd.f32 %v3030_v62, %v2968_v22  ;;  %v1501_v60 = vadd.f32 %v3038_v47, %v2970_v63 }
 0x409   : > { %v1604_v38 = vmax.f32 %v1467_v52, 0.0  ;;  %v1471_v7 = vadd.f32 %v1470_v37, %v2958_v23  ;;  %v1859_v10 = vmul.f32 %v2996_v14, %v1603_v42  ;;  %v1609_v42 = vmax.f32 %v1481_v12, 0.0  ;;  %v3118_v37 = vpop.permute.xlu1 %1797 }
 0x40a   : > { %v1472_v17 = vpop.f32.mrf.mxu0  ;;  %v3095_v54 = vpop.f32.mrf.mxu1  ;;  %v1951_v28 = vadd.f32 %v1950_v1, %v1858_v21  ;;  %v1614_v1 = vmax.f32 %v1493_v59, 0.0  ;;  %v3296_v59 = vld [vmem:[#allocation7_spill] sm:$0xff] }
 0x40b   : > { %v1605_v19 = vmax.f32 %v1471_v7, 0.0  ;;  %v1473_v35 = vadd.f32 %v1472_v17, %v2958_v23  ;;  %v1860_v2 = vmul.f32 %v2996_v14, %v1604_v38  ;;  %v1915_v16 = vadd.f32 %v1914_v29, %v1859_v10  ;;  %v3132_v61 = vpop.permute.xlu0 %1267 }
 0x40c   : > { %v1474_v43 = vpop.f32.mrf.mxu0  ;;  %v3103_v50 = vpop.f32.mrf.mxu1  ;;  %v1610_v38 = vmax.f32 %v1483_v30, 0.0  ;;  %v1611_v7 = vmax.f32 %v1485_v51, 0.0  ;;  %v1865_v21 = vmul.f32 %v3002_v33, %v1609_v42  ;;  %v1613_v17 = vmax.f32 %v1491_v3, 0.0 }
 0x40d   : > { %v1861_v46 = vmul.f32 %v2998_v8, %v1605_v19  ;;  %v1606_v55 = vmax.f32 %v1473_v35, 0.0  ;;  %v1475_v23 = vadd.f32 %v1474_v43, %v2960_v5  ;;  %v1952_v12 = vadd.f32 %v1951_v28, %v1860_v2  ;;  %v3143_v47 = vpop.permute.xlu1 %1802 }
 0x40e   : > { %v1476_v52 = vpop.f32.mrf.mxu0  ;;  %v3114_v49 = vpop.f32.mrf.mxu1  ;;  %v1497_v10 = vadd.f32 %v3034_v41, %v2968_v22  ;;  %v1866_v51 = vmul.f32 %v3002_v33, %v1610_v38  ;;  %v1503_v29 = vadd.f32 %v3041_v36, %v2970_v63  ;;  %v1505_v22 = vadd.f32 %v3047_v39, %v2972_v25 }
 0x40f   : > { %v1862_v4 = vmul.f32 %v2998_v8, %v1606_v55  ;;  %v1607_v14 = vmax.f32 %v1475_v23, 0.0  ;;  %v1477_v48 = vadd.f32 %v1476_v52, %v2960_v5  ;;  %v1916_v34 = vadd.f32 %v1915_v16, %v1861_v46 }
 0x410   : > { %v3124_v40 = vpop.f32.mrf.mxu1  ;;  %v1612_v5 = vmax.f32 %v1487_v58, 0.0  ;;  %v1867_v43 = vmul.f32 %v3004_v26, %v1611_v7  ;;  %v1615_v2 = vmax.f32 %v1495_v0, 0.0  ;;  %v1616_v33 = vmax.f32 %v1497_v10, 0.0 }
 0x411   : > { %v1863_v44 = vmul.f32 %v3000_v32, %v1607_v14  ;;  %v1608_v8 = vmax.f32 %v1477_v48, 0.0  ;;  %v1953_v62 = vadd.f32 %v1952_v12, %v1862_v4  ;;  %v1507_v42 = vadd.f32 %v3054_v45, %v2972_v25  ;;  %v3154_v14 = vpop.permute.xlu0 %1272 }
 0x412   : > { %v3130_v19 = vpop.f32.mrf.mxu1  ;;  %v1868_v23 = vmul.f32 %v3004_v26, %v1612_v5  ;;  %v1617_v36 = vmax.f32 %v1501_v60, 0.0  ;;  %v1511_v39 = vadd.f32 %v3060_v31, %v2974_v13  ;;  %v1870_v28 = vmul.f32 %v3006_v9, %v1614_v1  ;;  %v3298_v5 = vld [vmem:[#allocation10_spill] sm:$0xff]  ;;  %v3299_v60 = vld [vmem:[#allocation8_spill] sm:$0xff] }
 0x413   : > { %v1917_v35 = vadd.f32 %v1916_v34, %v1863_v44  ;;  %v1864_v30 = vmul.f32 %v3000_v32, %v1608_v8  ;;  %v1869_v32 = vmul.f32 %v3006_v9, %v1613_v17  ;;  %v1618_v52 = vmax.f32 %v1503_v29, 0.0 }
 0x414   : > { %v1534_v41 = vpop.f32.mrf.mxu1  ;;  %v1619_v16 = vmax.f32 %v1505_v22, 0.0  ;;  %v1513_v26 = vadd.f32 %v3068_v53, %v2974_v13  ;;  %v1871_v48 = vmul.f32 %v3008_v6, %v1615_v2  ;;  %v1515_v25 = vadd.f32 %v3075_v20, %v2976_v15  ;;  %v3297_v53 = vld [vmem:[#allocation9_spill] sm:$0xff]  ;;  %v3300_v2 = vld [vmem:[#allocation11_spill] sm:$0xff] }
 0x415   : > { %v1918_v46 = vadd.f32 %v1917_v35, %v1865_v21  ;;  %v1954_v55 = vadd.f32 %v1953_v62, %v1864_v30  ;;  %v1872_v31 = vmul.f32 %v3008_v6, %v1616_v33  ;;  %v1620_v7 = vmax.f32 %v1507_v42, 0.0  ;;  %v3165_v21 = vpop.permute.xlu1 %1807 }
 0x416   : > { %v1536_v63 = vpop.f32.mrf.mxu1  ;;  %v1517_v9 = vadd.f32 %v3080_v57, %v2976_v15  ;;  %v1521_v0 = vadd.f32 %v3087_v18, %v3296_v59  ;;  %v1873_v12 = vmul.f32 %v3297_v53, %v1617_v36  ;;  %v1621_v34 = vmax.f32 %v1511_v39, 0.0  ;;  %v3302_v36 = vld [vmem:[#allocation15_spill] sm:$0xff] }
 0x417   : > { %v1919_v58 = vadd.f32 %v1918_v46, %v1867_v43  ;;  %v1955_v3 = vadd.f32 %v1954_v55, %v1866_v51  ;;  %v1874_v20 = vmul.f32 %v3297_v53, %v1618_v52  ;;  %v1875_v17 = vmul.f32 %v3298_v5, %v1619_v16  ;;  %v3176_v43 = vpop.permute.xlu0 %1277 }
 0x418   : > { %v1540_v4 = vpop.f32.mrf.mxu1  ;;  %v1622_v6 = vmax.f32 %v1513_v26, 0.0  ;;  %v1523_v10 = vadd.f32 %v3095_v54, %v3296_v59  ;;  %v1623_v57 = vmax.f32 %v1515_v25, 0.0  ;;  %v1525_v18 = vadd.f32 %v3103_v50, %v3299_v60  ;;  %v3304_v25 = vld [vmem:[#allocation14_spill] sm:$0xff] }
 0x419   : > { %v1920_v45 = vadd.f32 %v1919_v58, %v1869_v32  ;;  %v1956_v38 = vadd.f32 %v1955_v3, %v1868_v23  ;;  %v1876_v30 = vmul.f32 %v3298_v5, %v1620_v7  ;;  %v1624_v51 = vmax.f32 %v1517_v9, 0.0  ;;  %v3301_v23 = vld [vmem:[#allocation13_spill] sm:$0xff]  ;;  %v3186_v26 = vpop.permute.xlu1 %1812 }
 0x41a   : > { %v1542_v13 = vpop.f32.mrf.mxu1  ;;  %v1625_v1 = vmax.f32 %v1521_v0, 0.0  ;;  %v1527_v29 = vadd.f32 %v3114_v49, %v3299_v60  ;;  %v1877_v46 = vmul.f32 %v3300_v2, %v1621_v34  ;;  %v1531_v32 = vadd.f32 %v3124_v40, %v3301_v23  ;;  %v3303_v49 = vld [vmem:[#allocation12_spill] sm:$0xff] }
 0x41b   : > { %v1921_v44 = vadd.f32 %v1920_v45, %v1871_v48  ;;  %v1957_v8 = vadd.f32 %v1956_v38, %v1870_v28  ;;  %v1878_v50 = vmul.f32 %v3300_v2, %v1622_v6  ;;  %v1626_v33 = vmax.f32 %v1523_v10, 0.0 }
 0x41c   : > { %v1544_v15 = vpop.f32.mrf.mxu1  ;;  %v1533_v42 = vadd.f32 %v3130_v19, %v3301_v23  ;;  %v1535_v39 = vadd.f32 %v1534_v41, %v3302_v36  ;;  %v1879_v3 = vmul.f32 %v3303_v49, %v1623_v57  ;;  %v1627_v28 = vmax.f32 %v1525_v18, 0.0  ;;  %v3305_v41 = vld [vmem:[#allocation17_spill] sm:$0xff] }
 0x41d   : > { %v1922_v62 = vadd.f32 %v1921_v44, %v1873_v12  ;;  %v1958_v35 = vadd.f32 %v1957_v8, %v1872_v31  ;;  %v1880_v48 = vmul.f32 %v3303_v49, %v1624_v51  ;;  %v1881_v40 = vmul.f32 %v3304_v25, %v1625_v1  ;;  %v3194_v8 = vpop.permute.xlu0 %1282  ;;  %v1818_v51 = vpop.permute.xlu1 %1817 }
 0x41e   : > { %v1546_v22 = vpop.f32.mrf.mxu1  ;;  %v1628_v45 = vmax.f32 %v1527_v29, 0.0  ;;  %v1537_v38 = vadd.f32 %v1536_v63, %v3302_v36  ;;  %v1629_v9 = vmax.f32 %v1531_v32, 0.0  ;;  %v1541_v59 = vadd.f32 %v1540_v4, %v3305_v41 }
 0x41f   : > { %v1923_v54 = vadd.f32 %v1922_v62, %v1875_v17  ;;  %v1959_v55 = vadd.f32 %v1958_v35, %v1874_v20  ;;  %v1882_v0 = vmul.f32 %v3304_v25, %v1626_v33  ;;  %v1630_v53 = vmax.f32 %v1533_v42, 0.0  ;;  %v3306_v20 = vld [vmem:[#allocation16_spill] sm:$0xff] }
 0x420   : > { %v1550_v58 = vpop.f32.mrf.mxu1  ;;  %v1631_v12 = vmax.f32 %v1535_v39, 0.0  ;;  %v1543_v34 = vadd.f32 %v1542_v13, %v3305_v41  ;;  %v1883_v5 = vmul.f32 %v3306_v20, %v1627_v28  ;;  %v1545_v63 = vadd.f32 %v1544_v15, %v3082_v24 }
 0x421   : > { %v1924_v52 = vadd.f32 %v1923_v54, %v1877_v46  ;;  %v1960_v16 = vadd.f32 %v1959_v55, %v1876_v30  ;;  %v1884_v10 = vmul.f32 %v3306_v20, %v1628_v45  ;;  %v1632_v57 = vmax.f32 %v1537_v38, 0.0  ;;  %v1288_v36 = vpop.permute.xlu0 %1287 }
 0x422   : > { %v1552_v31 = vpop.f32.mrf.mxu1  ;;  %v1547_v4 = vadd.f32 %v1546_v22, %v3082_v24  ;;  %v1551_v60 = vadd.f32 %v1550_v58, %v3105_v27  ;;  %v1885_v13 = vmul.f32 %v3070_v56, %v1629_v9  ;;  %v1633_v30 = vmax.f32 %v1541_v59, 0.0 }
 0x423   : > { %v1925_v7 = vadd.f32 %v1924_v52, %v1879_v3  ;;  %v1961_v19 = vadd.f32 %v1960_v16, %v1878_v50  ;;  %v1886_v1 = vmul.f32 %v3070_v56, %v1630_v53  ;;  %v1887_v29 = vmul.f32 %v3089_v11, %v1631_v12 }
 0x424   : > { %v1554_v44 = vpop.f32.mrf.mxu1  ;;  %v1634_v2 = vmax.f32 %v1543_v34, 0.0  ;;  %v1553_v15 = vadd.f32 %v1552_v31, %v3105_v27  ;;  %v1635_v24 = vmax.f32 %v1545_v63, 0.0  ;;  %v1888_v23 = vmul.f32 %v3089_v11, %v1632_v57 }
 0x425   : > { %v1926_v17 = vadd.f32 %v1925_v7, %v1881_v40  ;;  %v1962_v6 = vadd.f32 %v1961_v19, %v1880_v48  ;;  %v1555_v22 = vadd.f32 %v1554_v44, %v3132_v61  ;;  %v1636_v32 = vmax.f32 %v1547_v4, 0.0  ;;  %v1293_v12 = vpop.permute.xlu0 %1292 }
 0x426   : > { %v1556_v18 = vpop.f32.mrf.mxu1  ;;  %v1637_v50 = vmax.f32 %v1551_v60, 0.0  ;;  %v1889_v58 = vmul.f32 %v3118_v37, %v1633_v30  ;;  %v1890_v49 = vmul.f32 %v3118_v37, %v1634_v2  ;;  %v1638_v3 = vmax.f32 %v1553_v15, 0.0 }
 0x427   : > { %v1927_v62 = vadd.f32 %v1926_v17, %v1883_v5  ;;  %v1963_v35 = vadd.f32 %v1962_v6, %v1882_v0  ;;  %v1557_v33 = vadd.f32 %v1556_v18, %v3132_v61  ;;  %v1891_v48 = vmul.f32 %v3143_v47, %v1635_v24  ;;  %v1823_v61 = vpop.permute.xlu1 %1822 }
 0x428   : > { %v1560_v46 = vpop.f32.mrf.mxu1  ;;  %v1639_v25 = vmax.f32 %v1555_v22, 0.0  ;;  %v1892_v40 = vmul.f32 %v3143_v47, %v1636_v32  ;;  %v1893_v45 = vmul.f32 %v3165_v21, %v1637_v50  ;;  %v1894_v41 = vmul.f32 %v3165_v21, %v1638_v3 }
 0x429   : > { %v1964_v54 = vadd.f32 %v1963_v35, %v1884_v10  ;;  %v1928_v55 = vadd.f32 %v1927_v62, %v1885_v13  ;;  %v1561_v27 = vadd.f32 %v1560_v46, %v3154_v14  ;;  %v1640_v38 = vmax.f32 %v1557_v33, 0.0  ;;  %v1298_v15 = vpop.permute.xlu0 %1297 }
 0x42a   : > { %v1562_v42 = vpop.f32.mrf.mxu1  ;;  %v1895_v47 = vmul.f32 %v3186_v26, %v1639_v25 }
 0x42b   : > { %v1965_v56 = vadd.f32 %v1964_v54, %v1886_v1  ;;  %v1929_v39 = vadd.f32 %v1928_v55, %v1887_v29  ;;  %v1563_v28 = vadd.f32 %v1562_v42, %v3154_v14  ;;  %v1641_v9 = vmax.f32 %v1561_v27, 0.0 }
 0x42c   : > { %v1564_v52 = vpop.f32.mrf.mxu1  ;;  %v1896_v10 = vmul.f32 %v3186_v26, %v1640_v38 }
 0x42d   : > { %v1966_v16 = vadd.f32 %v1965_v56, %v1888_v23  ;;  %v1930_v11 = vadd.f32 %v1929_v39, %v1889_v58  ;;  %v1565_v31 = vadd.f32 %v1564_v52, %v3176_v43  ;;  %v1642_v59 = vmax.f32 %v1563_v28, 0.0 }
 0x42e   : > { %v1566_v7 = vpop.f32.mrf.mxu1  ;;  %v1897_v57 = vmul.f32 %v1818_v51, %v1641_v9 }
 0x42f   : > { %v1967_v19 = vadd.f32 %v1966_v16, %v1890_v49  ;;  %v1931_v37 = vadd.f32 %v1930_v11, %v1891_v48  ;;  %v1567_v14 = vadd.f32 %v1566_v7, %v3176_v43  ;;  %v1643_v0 = vmax.f32 %v1565_v31, 0.0  ;;  %v1828_v43 = vpop.permute.xlu1 %1827  ;;  %v1838_v49 = vpop.permute.xlu0 %1837 }
 0x430   : > { %v1570_v53 = vpop.f32.mrf.mxu1  ;;  %v1898_v4 = vmul.f32 %v1818_v51, %v1642_v59 }
 0x431   : > { %v1968_v34 = vadd.f32 %v1967_v19, %v1892_v40  ;;  %v1932_v44 = vadd.f32 %v1931_v37, %v1893_v45  ;;  %v1571_v20 = vadd.f32 %v1570_v53, %v3194_v8  ;;  %v1644_v5 = vmax.f32 %v1567_v14, 0.0 }
 0x432   : > { %v1572_v17 = vpop.f32.mrf.mxu1  ;;  %v1899_v21 = vmul.f32 %v1823_v61, %v1643_v0  ;;  %v1989_v37 = vlaneseq }
 0x433   : > { %v1969_v6 = vadd.f32 %v1968_v34, %v1894_v41  ;;  %v1933_v63 = vadd.f32 %v1932_v44, %v1895_v47  ;;  %v1573_v60 = vadd.f32 %v1572_v17, %v3194_v8  ;;  %v1645_v13 = vmax.f32 %v1571_v20, 0.0  ;;  %v1833_v32 = vpop.permute.xlu1 %1832 }
 0x434   : > { %v1574_v18 = vpop.f32.mrf.mxu1  ;;  %v1900_v1 = vmul.f32 %v1823_v61, %v1644_v5  ;;  %v1990_v53 = vshrl.u32 %v1989_v37, 7  ;;  %vm2027_vm3 = vcmp.lt.s32.totalorder %v1989_v37, 256 }
 0x435   : > { %v1970_v62 = vadd.f32 %v1969_v6, %v1896_v10  ;;  %v1934_v35 = vadd.f32 %v1933_v63, %v1897_v57  ;;  %v1575_v30 = vadd.f32 %v1574_v18, %v1288_v36  ;;  %v1646_v29 = vmax.f32 %v1573_v60, 0.0  ;;  %v1987_v6 = vpop.permute.xlu0 %1986 }
 0x436   : > { %v1576_v2 = vpop.f32.mrf.mxu1  ;;  %v1901_v23 = vmul.f32 %v1828_v43, %v1645_v13  ;;  %v1991_v20 = vsub.s32 0, %v1990_v53 }
 0x437   : > { %v1971_v46 = vadd.f32 %v1970_v62, %v1898_v4  ;;  %v1935_v54 = vadd.f32 %v1934_v35, %v1899_v21  ;;  %v1647_v55 = vmax.f32 %v1575_v30, 0.0  ;;  %v1577_v24 = vadd.f32 %v1576_v2, %v1288_v36  ;;  %v1843_v45 = vpop.permute.xlu1 %1842 }
 0x438   : > { %v1580_v26 = vpop.f32.mrf.mxu1  ;;  %v1902_v42 = vmul.f32 %v1828_v43, %v1646_v29  ;;  %v1992_v57 = vrot.slane %v1987_v6, %v1991_v20  ;;  %v2337_v2 = vmov 1966171168  }
 0x439   : > { %v1972_v22 = vadd.f32 %v1971_v46, %v1900_v1  ;;  %v1648_v51 = vmax.f32 %v1577_v24, 0.0  ;;  %v1581_v50 = vadd.f32 %v1580_v26, %v1293_v12  ;;  %v1936_v33 = vadd.f32 %v1935_v54, %v1901_v23 }
 0x43a   : > { %v1582_v8 = vpop.f32.mrf.mxu1  ;;  %v1903_v56 = vmul.f32 %v1833_v32, %v1647_v55 }
 0x43b   : > { %v1583_v39 = vadd.f32 %v1582_v8, %v1293_v12  ;;  %v1649_v58 = vmax.f32 %v1581_v50, 0.0  ;;  %v1973_v3 = vadd.f32 %v1972_v22, %v1902_v42  ;;  %v1904_v28 = vmul.f32 %v1833_v32, %v1648_v51 }
 0x43c   : > { %v1584_v27 = vpop.f32.mrf.mxu1  ;;  %v1937_v48 = vadd.f32 %v1936_v33, %v1903_v56 }
 0x43d   : > { %v1650_v52 = vmax.f32 %v1583_v39, 0.0  ;;  %v1585_v16 = vadd.f32 %v1584_v27, %v1298_v15  ;;  %v1905_v11 = vmul.f32 %v1838_v49, %v1649_v58  ;;  %v1974_v38 = vadd.f32 %v1973_v3, %v1904_v28 }
 0x43e   : > { %v1586_v36 = vpop.f32.mrf.mxu1 }
 0x43f   : > { %v1906_v25 = vmul.f32 %v1838_v49, %v1650_v52  ;;  %v1651_v61 = vmax.f32 %v1585_v16, 0.0  ;;  %v1587_v40 = vadd.f32 %v1586_v36, %v1298_v15  ;;  %v1938_v31 = vadd.f32 %v1937_v48, %v1905_v11 }
 0x440   : > { %v2011_v15 = vunpack.c.l.s4 %v2337_v2 }
 0x441   : > { %v1907_v7 = vmul.f32 %v1843_v45, %v1651_v61  ;;  %v1652_v19 = vmax.f32 %v1587_v40, 0.0  ;;  %v1975_v9 = vadd.f32 %v1974_v38, %v1906_v25 }
 0x442   : > { %v2012_v46 = vunpack.c.0.s8 %v2011_v15 }
 0x443   : > { %v1939_v14 = vadd.f32 %v1938_v31, %v1907_v7  ;;  %v1908_v41 = vmul.f32 %v1843_v45, %v1652_v19 }
 0x444   : > { %v2015_v55 = vsub.s32 %v2012_v46, %v1990_v53 }
 0x445   : > { %v1940_v59 = vrot.slane %v1939_v14, 4  ;;  %v1976_v0 = vadd.f32 %v1975_v9, %v1908_v41 }
 0x447   : > { %v1941_v12 = vadd.f32 %v1940_v59, %v1939_v14  ;;  %v1977_v34 = vrot.slane %v1976_v0, 4 }
 0x449   : > { %v1942_v44 = vrot.slane %v1941_v12, 2  ;;  %v1978_v47 = vadd.f32 %v1977_v34, %v1976_v0 }
 0x44b   : > { %v1943_v5 = vadd.f32 %v1942_v44, %v1941_v12  ;;  %v1979_v17 = vrot.slane %v1978_v47, 2 }
 0x44d   : > { %v1944_v63 = vrot.slane %v1943_v5, 1  ;;  %v1980_v10 = vadd.f32 %v1979_v17, %v1978_v47 }
 0x44f   : > { %v1945_v43 = vadd.f32 %v1944_v63, %v1943_v5  ;;  %v1981_v4 = vrot.slane %v1980_v10, 1 }
 0x451   : > { %v1993_v21 = vadd.f32 %v1992_v57, %v1945_v43  ;;  %v1982_v60 = vadd.f32 %v1981_v4, %v1980_v10 }
 0x453   : > { %v2165_v18 = vmul.f32 -1.442695, %v1993_v21  ;;  %v1994_v62 = vadd.f32 %v1992_v57, %v1982_v60 }
 0x455   : > { %2266 = vpow2.f32 %v2165_v18  ;;  %v2166_v35 = vmul.f32 -1.442695, %v1994_v62 }
 0x457   : > { %2268 = vpow2.f32 %v2166_v35 }
 0x462   : > { %v2267_v13 = vpop.eup %2266 }
 0x463   : > { %v2001_v30 = vadd.f32 1.0, %v2267_v13 }
 0x464   : > { %v2269_v1 = vpop.eup %2268 }
 0x465   : > { %v2002_v29 = vadd.f32 1.0, %v2269_v1  ;;  %2270 = vrcp.f32 %v2001_v30 }
 0x467   : > { %2272 = vrcp.f32 %v2002_v29 }
 0x472   : > { %v2271_v54 = vpop.eup %2270 }
 0x474   : > { %v2273_v24 = vpop.eup %2272 }
 0x475   : > { %v2009_v26 = vcombine.low %v2271_v54, %v2273_v24 }
 0x477   : > { %v2016_v22 = vrot.slane %v2009_v26, %v2015_v55 }
 0x479   : > { %v2023_v23 = vrot.slane %v2016_v22, %v2015_v55 }
 0x47b   : > { %2029 = vst.msk [vmem:[%s426_s16] sm:$0x3] %vm2027_vm3, %v2023_v23 }
 0x47c   : > { %2287 = shalt.err (!%p2284_p5)
}
 0x47d   : > { %s2288_s14 = scalar_lea.hbm %s2043_s25, 32  ;;  %s2292_s16 = scalar_lea.hbm %s3269_s11, 128 }
 0x47e   : > { %p2289_p7 = scmp.ne.s32.totalorder %s2043_s25, %s2288_s14  ;;  %p2293_p11 = scmp.lt.s32.totalorder %s2043_s25, %s3269_s11 }
 0x47f   : > { %p2294_p12 = scmp.lt.s32.totalorder %s2292_s16, %s2288_s14 }
 0x480   : > { %p2290_p9 = pnand %p2289_p7, %p2440_p6 }
 0x481   : > { %p2295_p13 = por %p2294_p12, %p2293_p11 }
 0x482   : > { %p2291_p10 = pneg %p2290_p9 }
 0x484   : > { %p2296_p0 = pnand %p2295_p13, %p2291_p10 }
 0x486   : > { %2299 = shalt.err (!%p2296_p0)
}
 0x487   : > { %2190 = dma.vmem_to_hbm [thread:$0]  (%p2440_p6), %s2046_s17, 32, %s2043_s25, %s2031_s26  }
 0x488 PF: > { %p2196_p1 = scmp.ge.s32.totalorder %s2334_s22, 2  ;;  %s2057_s0 = sand.u32 1, %s2322_s19  }
 0x489   : > { %s2058_s12 = scalar_lea.sflag [#allocation5], %s2057_s0 }
 0x48a   : > { %p2193_p2 = pnand %p2196_p1, %p2444_p8 }
 0x48c   : > { %p2194_p3 = pneg %p2193_p2 }
 0x48e   : > { %2317 = dma.done.wait (%p2194_p3), %s2058_s12, 32  }
 0x48f   : > { %2319 = vsyncadd (%p2194_p3), %s2058_s12, 4294967264  ;;  %p23_p4 = scmp.ge.s32.totalorder %s2425_s24, 6   ;;  %s3307_s19 = smov %s2326_s20 }
 0x490   : > { %s3308_s20 = smov %s2330_s21  ;;  %s3309_s21 = smov %s2438_s27 }
 0x491   : > { %s3310_s22 = smov %s2425_s24  ;;  %25 = sbr.rel (!%p23_p4) target bundleno = 6 (0x6), region = 142 }
 0x496   :  { %2063 = vsyncpa [#allocation5], 1 }
 0x497   :  { %2065 = vsyncpa [#allocation5 + $0x1], 1 }

</bundles_post_ra>
